<compile_context>
chip_gen: v5e
topology: v5e:2x2
jax: 0.10.0
libtpu: 0.0.40
codegen_flags: <defaults>
</compile_context>

<pallas_src>
import math
import functools

import jax
import jax.numpy as jnp
import numpy as np
from jax.experimental import pallas as pl
from jax.experimental.pallas import tpu as pltpu

# ----------------------------- tiny GPT config ------------------------------
VOCAB = 128      # vocab_size
BLOCK_SIZE = 16  # max sequence length
N_LAYER = 2
N_HEAD = 4
N_EMBD = 32


# ------------------------------ kernel helpers ------------------------------
def _norm(x, eps=1e-5):
    # plain normalization; LN affine (w, b) is folded into the next matmul
    mu = jnp.mean(x, axis=-1, keepdims=True)
    var = jnp.mean((x - mu) ** 2, axis=-1, keepdims=True)
    return (x - mu) * jax.lax.rsqrt(var + eps)


def _gelu_tanh(x):
    c = math.sqrt(2.0 / math.pi)
    return 0.5 * x * (1.0 + jnp.tanh(c * (x + 0.044715 * x * x * x)))


# -------------------------------- the kernel --------------------------------
def gpt_kernel(x_ref, bias_ref,
               attn_w_ref, attn_b_ref,
               proj_w_ref, proj_b_ref,
               fc_w_ref, fc_b_ref,
               fcp_w_ref, fcp_b_ref,
               wte_ref, lm_b_ref,
               logits_ref, *, num_heads):
    BT, C = x_ref.shape
    L = attn_w_ref.shape[0]
    H = num_heads
    hd = C // H
    bf16 = jnp.bfloat16
    f32 = jnp.float32

    # block-diagonal causal additive bias (0 / -1e30), hoisted once.
    bias = bias_ref[...]                       # (BT, BT) f32
    x = x_ref[...]                             # (BT, C)  f32 residual stream

    for l in range(L):
        # ----------------------------- attention -----------------------------
        xn = _norm(x)                                                  # (BT, C)
        # fused QKV projection (ln1 affine + q-scale folded into weights/bias)
        qkv = jnp.dot(xn.astype(bf16), attn_w_ref[l],
                      preferred_element_type=f32) + attn_b_ref[l]      # (BT, 3C)

        heads = []
        for h in range(H):
            qh = qkv[:, h * hd:(h + 1) * hd].astype(bf16)              # (BT, hd)
            kh = qkv[:, C + h * hd:C + (h + 1) * hd].astype(bf16)
            vh = qkv[:, 2 * C + h * hd:2 * C + (h + 1) * hd].astype(bf16)
            # scores for BOTH batch elements at once (block-diag bias masks
            # cross-sequence and non-causal entries). scale already in Q.
            s = jax.lax.dot_general(qh, kh, (((1,), (1,)), ((), ())),
                                    preferred_element_type=f32)        # (BT, BT)
            s = s + bias
            s = s - jnp.max(s, axis=-1, keepdims=True)
            p = jnp.exp(s)
            p = p * pl.reciprocal(jnp.sum(p, axis=-1, keepdims=True),
                                  approx=True)
            heads.append(jnp.dot(p.astype(bf16), vh,
                                 preferred_element_type=f32))          # (BT, hd)

        y = jnp.concatenate(heads, axis=-1)                            # (BT, C)
        # fused output projection: one (BT,C) x (C,C) matmul
        x = x + jnp.dot(y.astype(bf16), proj_w_ref[l],
                        preferred_element_type=f32) + proj_b_ref[l]

        # -------------------------------- MLP --------------------------------
        xn = _norm(x)
        hmid = _gelu_tanh(jnp.dot(xn.astype(bf16), fc_w_ref[l],
                                  preferred_element_type=f32) + fc_b_ref[l])
        x = x + jnp.dot(hmid.astype(bf16), fcp_w_ref[l],
                        preferred_element_type=f32) + fcp_b_ref[l]

    # ------------------- final LN + tied lm_head (lane-dense) ----------------
    xf = _norm(x)
    logits_ref[...] = jnp.dot(xf.astype(bf16), wte_ref[...],
                              preferred_element_type=f32) + lm_b_ref[...]


# ------------------------------ python wrapper -------------------------------
def gpt_pallas(idx, p, targets=None):
    B, T = idx.shape
    C, H, L = N_EMBD, N_HEAD, N_LAYER
    hd = C // H
    BT = B * T
    bf16 = jnp.bfloat16
    f32 = jnp.float32

    # embedding lookups (glue — gather stays in plain JAX), f32 residual stream
    x = (p['wte'][idx] + p['wpe'][jnp.arange(T)][None]).astype(f32)
    x2 = x.reshape(BT, C)

    # precomputed additive causal mask, block-diagonal over the folded batch
    pos = jnp.arange(BT)
    keep = ((pos[:, None] // T) == (pos[None, :] // T)) & \
           (pos[:, None] >= pos[None, :])
    attn_bias = jnp.where(keep, 0.0, -1e30).astype(f32)                # (BT, BT)

    # ---- weight preparation (glue, exact in f32, then cast to bf16) --------
    # transpose to (in, out)
    attn_w_t = jnp.swapaxes(p['attn_w'], 1, 2).astype(f32)             # (L, C, 3C)
    proj_w_t = jnp.swapaxes(p['proj_w'], 1, 2).astype(f32)             # (L, C, C)
    fc_w_t = jnp.swapaxes(p['fc_w'], 1, 2).astype(f32)                 # (L, C, 4C)
    fcp_w_t = jnp.swapaxes(p['fcp_w'], 1, 2).astype(f32)               # (L, 4C, C)
    wte_t = p['wte'].T.astype(f32)                                     # (C, V)

    # fold ln1 affine + 1/sqrt(hd) score scale into the QKV projection
    scale = 1.0 / math.sqrt(hd)
    col_scale = jnp.concatenate([jnp.full((C,), scale, f32),
                                 jnp.ones((2 * C,), f32)])             # (3C,)
    attn_w_f = (p['ln1_w'][:, :, None] * attn_w_t) * col_scale[None, None, :]
    attn_b_f = (jnp.einsum('lc,lco->lo', p['ln1_b'], attn_w_t)
                + p['attn_b']) * col_scale[None, :]                    # (L, 3C)

    # fold ln2 affine into the MLP fc projection
    fc_w_f = p['ln2_w'][:, :, None] * fc_w_t
    fc_b_f = jnp.einsum('lc,lco->lo', p['ln2_b'], fc_w_t) + p['fc_b']  # (L, 4C)

    # fold ln_f affine into the tied lm_head
    wte_f = p['lnf_w'][:, None] * wte_t                                # (C, V)
    lm_b = (p['lnf_b'] @ wte_t)[None, :]                               # (1, V)

    args = (x2, attn_bias,
            attn_w_f.astype(bf16), attn_b_f[:, None, :],
            proj_w_t.astype(bf16), p['proj_b'][:, None, :],
            fc_w_f.astype(bf16), fc_b_f[:, None, :],
            fcp_w_t.astype(bf16), p['fcp_b'][:, None, :],
            wte_f.astype(bf16), lm_b)

    kernel = functools.partial(gpt_kernel, num_heads=H)
    logits2d = pl.pallas_call(
        kernel,
        out_shape=jax.ShapeDtypeStruct((BT, VOCAB), jnp.float32),
        in_specs=[pl.BlockSpec(memory_space=pltpu.MemorySpace.VMEM)] * len(args),
        out_specs=pl.BlockSpec(memory_space=pltpu.MemorySpace.VMEM),
        compiler_params=pltpu.CompilerParams(vmem_limit_bytes=32 * 1024 * 1024),
    )(*args)

    logits = logits2d.reshape(B, T, VOCAB)

    loss = None
    if targets is not None:
        # TODO(synk): cross-entropy loss path kept in plain JAX (tiny reduction).
        logp = jax.nn.log_softmax(logits, axis=-1)
        loss = -jnp.mean(jnp.take_along_axis(logp, targets[..., None], axis=-1))
    return logits, loss


# ------------------------- plain-JAX reference (check) -----------------------
def gpt_reference(idx, p):
    B, T = idx.shape
    C, H, L = N_EMBD, N_HEAD, N_LAYER
    hd = C // H
    x = p['wte'][idx] + p['wpe'][jnp.arange(T)][None]

    def ln(x, w, b):
        mu = x.mean(-1, keepdims=True)
        v = ((x - mu) ** 2).mean(-1, keepdims=True)
        return (x - mu) / jnp.sqrt(v + 1e-5) * w + b

    def gelu(x):
        return 0.5 * x * (1 + jnp.tanh(math.sqrt(2 / math.pi) * (x + 0.044715 * x ** 3)))

    mask = jnp.tril(jnp.ones((T, T), bool))
    for l in range(L):
        h_ = ln(x, p['ln1_w'][l], p['ln1_b'][l])
        qkv = h_ @ p['attn_w'][l].T + p['attn_b'][l]
        q, k, v = jnp.split(qkv, 3, axis=-1)
        q = q.reshape(B, T, H, hd).transpose(0, 2, 1, 3)
        k = k.reshape(B, T, H, hd).transpose(0, 2, 1, 3)
        v = v.reshape(B, T, H, hd).transpose(0, 2, 1, 3)
        s = (q @ k.transpose(0, 1, 3, 2)) / math.sqrt(hd)
        s = jnp.where(mask, s, -jnp.inf)
        a = jax.nn.softmax(s, -1)
        y = (a @ v).transpose(0, 2, 1, 3).reshape(B, T, C)
        x = x + y @ p['proj_w'][l].T + p['proj_b'][l]
        h_ = ln(x, p['ln2_w'][l], p['ln2_b'][l])
        hm = gelu(h_ @ p['fc_w'][l].T + p['fc_b'][l])
        x = x + hm @ p['fcp_w'][l].T + p['fcp_b'][l]
    x = ln(x, p['lnf_w'], p['lnf_b'])
    return x @ p['wte'].T


# ------------------------------- param init ----------------------------------
def init_params(key):
    C, L = N_EMBD, N_LAYER
    std = 0.02
    res_std = 0.02 * (2 * L) ** -0.5  # NANOGPT_SCALE_INIT for residual projections
    ks = iter(jax.random.split(key, 8))

    def nrm(k, shape, s):
        return jax.random.normal(k, shape, jnp.float32) * s

    p = {}
    p['wte'] = nrm(next(ks), (VOCAB, C), std)          # tied with lm_head
    p['wpe'] = nrm(next(ks), (BLOCK_SIZE, C), std)
    p['ln1_w'] = jnp.ones((L, C), jnp.float32)
    p['ln1_b'] = jnp.zeros((L, C), jnp.float32)
    p['attn_w'] = nrm(next(ks), (L, 3 * C, C), std)
    p['attn_b'] = jnp.zeros((L, 3 * C), jnp.float32)
    p['proj_w'] = nrm(next(ks), (L, C, C), res_std)
    p['proj_b'] = jnp.zeros((L, C), jnp.float32)
    p['ln2_w'] = jnp.ones((L, C), jnp.float32)
    p['ln2_b'] = jnp.zeros((L, C), jnp.float32)
    p['fc_w'] = nrm(next(ks), (L, 4 * C, C), std)
    p['fc_b'] = jnp.zeros((L, 4 * C), jnp.float32)
    p['fcp_w'] = nrm(next(ks), (L, C, 4 * C), res_std)
    p['fcp_b'] = jnp.zeros((L, C), jnp.float32)
    p['lnf_w'] = jnp.ones((C,), jnp.float32)
    p['lnf_b'] = jnp.zeros((C,), jnp.float32)
    return p


# ----------------------------------- main ------------------------------------
if __name__ == "__main__":
    key = jax.random.PRNGKey(0)
    pkey, ikey = jax.random.split(key)
    params = init_params(pkey)

    B, T = 2, 8
    idx = jax.random.randint(ikey, (B, T), 0, VOCAB, dtype=jnp.int32)

    logits, _ = gpt_pallas(idx, params)
    logits = jax.block_until_ready(logits)
    assert logits.shape == (B, T, VOCAB)

    ref = gpt_reference(idx, params)
    np.testing.assert_allclose(np.asarray(logits), np.asarray(ref),
                               atol=2e-2, rtol=2e-2)
    print("KERNEL_OK")
</pallas_src>

<mosaic_0001>
module attributes {stable_mosaic.version = 11 : i64} {
  func.func @gpt_kernel(%arg0: memref<16x32xf32, #tpu.memory_space<vmem>>, %arg1: memref<16x16xf32, #tpu.memory_space<vmem>>, %arg2: memref<2x32x96xbf16, #tpu.memory_space<vmem>>, %arg3: memref<2x1x96xf32, #tpu.memory_space<vmem>>, %arg4: memref<2x32x32xbf16, #tpu.memory_space<vmem>>, %arg5: memref<2x1x32xf32, #tpu.memory_space<vmem>>, %arg6: memref<2x32x128xbf16, #tpu.memory_space<vmem>>, %arg7: memref<2x1x128xf32, #tpu.memory_space<vmem>>, %arg8: memref<2x128x32xbf16, #tpu.memory_space<vmem>>, %arg9: memref<2x1x32xf32, #tpu.memory_space<vmem>>, %arg10: memref<32x128xbf16, #tpu.memory_space<vmem>>, %arg11: memref<1x128xf32, #tpu.memory_space<vmem>>, %arg12: memref<16x128xf32, #tpu.memory_space<vmem>>) attributes {dimension_semantics = [], scalar_prefetch = 0 : i64, scratch_operands = 0 : i64, tpu.core_type = #tpu.core_type<tc>} {
    %c0 = arith.constant 0 : index
    %c0_0 = arith.constant 0 : index
    %0 = vector.load %arg1[%c0, %c0_0] : memref<16x16xf32, #tpu.memory_space<vmem>>, vector<16x16xf32>
    %c0_1 = arith.constant 0 : index
    %c0_2 = arith.constant 0 : index
    %1 = vector.load %arg0[%c0_1, %c0_2] : memref<16x32xf32, #tpu.memory_space<vmem>>, vector<16x32xf32>
    %cst = arith.constant dense<0.000000e+00> : vector<16xf32>
    %2 = vector.multi_reduction <add>, %1, %cst [1] : vector<16x32xf32> to vector<16xf32>
    %3 = vector.shape_cast %2 : vector<16xf32> to vector<16x1xf32>
    %cst_3 = arith.constant 3.200000e+01 : f32
    %4 = vector.broadcast %cst_3 : f32 to vector<16x1xf32>
    %5 = arith.divf %3, %4 : vector<16x1xf32>
    %6 = vector.broadcast %5 : vector<16x1xf32> to vector<16x32xf32>
    %7 = arith.subf %1, %6 : vector<16x32xf32>
    %8 = arith.mulf %7, %7 : vector<16x32xf32>
    %cst_4 = arith.constant dense<0.000000e+00> : vector<16xf32>
    %9 = vector.multi_reduction <add>, %8, %cst_4 [1] : vector<16x32xf32> to vector<16xf32>
    %10 = vector.shape_cast %9 : vector<16xf32> to vector<16x1xf32>
    %cst_5 = arith.constant 3.200000e+01 : f32
    %11 = vector.broadcast %cst_5 : f32 to vector<16x1xf32>
    %12 = arith.divf %10, %11 : vector<16x1xf32>
    %13 = vector.broadcast %5 : vector<16x1xf32> to vector<16x32xf32>
    %14 = arith.subf %1, %13 : vector<16x32xf32>
    %cst_6 = arith.constant 9.99999974E-6 : f32
    %15 = vector.broadcast %cst_6 : f32 to vector<16x1xf32>
    %16 = arith.addf %12, %15 : vector<16x1xf32>
    %17 = math.rsqrt %16 : vector<16x1xf32>
    %18 = vector.broadcast %17 : vector<16x1xf32> to vector<16x32xf32>
    %19 = arith.mulf %14, %18 : vector<16x32xf32>
    %20 = arith.truncf %19 : vector<16x32xf32> to vector<16x32xbf16>
    %c0_7 = arith.constant 0 : index
    %c0_8 = arith.constant 0 : index
    %c0_9 = arith.constant 0 : index
    %21 = vector.load %arg2[%c0_7, %c0_8, %c0_9] : memref<2x32x96xbf16, #tpu.memory_space<vmem>>, vector<1x32x96xbf16>
    %22 = vector.shape_cast %21 : vector<1x32x96xbf16> to vector<32x96xbf16>
    %cst_10 = arith.constant dense<0.000000e+00> : vector<16x96xf32>
    %23 = tpu.matmul %20, %22, %cst_10 {dimension_numbers = #tpu.dot_dimension_numbers<[1], [0], [0], [1], [0, 0, 1, 1], [], []>} : vector<16x32xbf16>, vector<32x96xbf16>, vector<16x96xf32> -> vector<16x96xf32>
    %c0_11 = arith.constant 0 : index
    %c0_12 = arith.constant 0 : index
    %c0_13 = arith.constant 0 : index
    %24 = vector.load %arg3[%c0_11, %c0_12, %c0_13] : memref<2x1x96xf32, #tpu.memory_space<vmem>>, vector<1x1x96xf32>
    %25 = vector.shape_cast %24 : vector<1x1x96xf32> to vector<1x96xf32>
    %26 = vector.broadcast %25 : vector<1x96xf32> to vector<16x96xf32>
    %27 = arith.addf %23, %26 : vector<16x96xf32>
    %28 = vector.extract_strided_slice %27 {offsets = [0, 0], sizes = [16, 8], strides = [1, 1]} : vector<16x96xf32> to vector<16x8xf32>
    %29 = arith.truncf %28 : vector<16x8xf32> to vector<16x8xbf16>
    %30 = vector.extract_strided_slice %27 {offsets = [0, 32], sizes = [16, 8], strides = [1, 1]} : vector<16x96xf32> to vector<16x8xf32>
    %31 = arith.truncf %30 : vector<16x8xf32> to vector<16x8xbf16>
    %32 = vector.extract_strided_slice %27 {offsets = [0, 64], sizes = [16, 8], strides = [1, 1]} : vector<16x96xf32> to vector<16x8xf32>
    %33 = arith.truncf %32 : vector<16x8xf32> to vector<16x8xbf16>
    %cst_14 = arith.constant dense<0.000000e+00> : vector<16x16xf32>
    %34 = tpu.matmul %29, %31, %cst_14 {dimension_numbers = #tpu.dot_dimension_numbers<[1], [1], [0], [0], [0, 0, 1, 0], [], []>} : vector<16x8xbf16>, vector<16x8xbf16>, vector<16x16xf32> -> vector<16x16xf32>
    %35 = arith.addf %34, %0 : vector<16x16xf32>
    %cst_15 = arith.constant dense<0xFF800000> : vector<16xf32>
    %36 = vector.multi_reduction <maximumf>, %35, %cst_15 [1] : vector<16x16xf32> to vector<16xf32>
    %37 = vector.shape_cast %36 : vector<16xf32> to vector<16x1xf32>
    %38 = vector.broadcast %37 : vector<16x1xf32> to vector<16x16xf32>
    %39 = arith.subf %35, %38 : vector<16x16xf32>
    %40 = math.exp %39 : vector<16x16xf32>
    %cst_16 = arith.constant dense<0.000000e+00> : vector<16xf32>
    %41 = vector.multi_reduction <add>, %40, %cst_16 [1] : vector<16x16xf32> to vector<16xf32>
    %42 = vector.shape_cast %41 : vector<16xf32> to vector<16x1xf32>
    %43 = tpu.reciprocal %42 {approx = true} : vector<16x1xf32> -> vector<16x1xf32>
    %44 = vector.broadcast %43 : vector<16x1xf32> to vector<16x16xf32>
    %45 = arith.mulf %40, %44 : vector<16x16xf32>
    %46 = arith.truncf %45 : vector<16x16xf32> to vector<16x16xbf16>
    %cst_17 = arith.constant dense<0.000000e+00> : vector<16x8xf32>
    %47 = tpu.matmul %46, %33, %cst_17 {dimension_numbers = #tpu.dot_dimension_numbers<[1], [0], [0], [1], [0, 0, 1, 1], [], []>} : vector<16x16xbf16>, vector<16x8xbf16>, vector<16x8xf32> -> vector<16x8xf32>
    %48 = vector.extract_strided_slice %27 {offsets = [0, 8], sizes = [16, 8], strides = [1, 1]} : vector<16x96xf32> to vector<16x8xf32>
    %49 = arith.truncf %48 : vector<16x8xf32> to vector<16x8xbf16>
    %50 = vector.extract_strided_slice %27 {offsets = [0, 40], sizes = [16, 8], strides = [1, 1]} : vector<16x96xf32> to vector<16x8xf32>
    %51 = arith.truncf %50 : vector<16x8xf32> to vector<16x8xbf16>
    %52 = vector.extract_strided_slice %27 {offsets = [0, 72], sizes = [16, 8], strides = [1, 1]} : vector<16x96xf32> to vector<16x8xf32>
    %53 = arith.truncf %52 : vector<16x8xf32> to vector<16x8xbf16>
    %cst_18 = arith.constant dense<0.000000e+00> : vector<16x16xf32>
    %54 = tpu.matmul %49, %51, %cst_18 {dimension_numbers = #tpu.dot_dimension_numbers<[1], [1], [0], [0], [0, 0, 1, 0], [], []>} : vector<16x8xbf16>, vector<16x8xbf16>, vector<16x16xf32> -> vector<16x16xf32>
    %55 = arith.addf %54, %0 : vector<16x16xf32>
    %cst_19 = arith.constant dense<0xFF800000> : vector<16xf32>
    %56 = vector.multi_reduction <maximumf>, %55, %cst_19 [1] : vector<16x16xf32> to vector<16xf32>
    %57 = vector.shape_cast %56 : vector<16xf32> to vector<16x1xf32>
    %58 = vector.broadcast %57 : vector<16x1xf32> to vector<16x16xf32>
    %59 = arith.subf %55, %58 : vector<16x16xf32>
    %60 = math.exp %59 : vector<16x16xf32>
    %cst_20 = arith.constant dense<0.000000e+00> : vector<16xf32>
    %61 = vector.multi_reduction <add>, %60, %cst_20 [1] : vector<16x16xf32> to vector<16xf32>
    %62 = vector.shape_cast %61 : vector<16xf32> to vector<16x1xf32>
    %63 = tpu.reciprocal %62 {approx = true} : vector<16x1xf32> -> vector<16x1xf32>
    %64 = vector.broadcast %63 : vector<16x1xf32> to vector<16x16xf32>
    %65 = arith.mulf %60, %64 : vector<16x16xf32>
    %66 = arith.truncf %65 : vector<16x16xf32> to vector<16x16xbf16>
    %cst_21 = arith.constant dense<0.000000e+00> : vector<16x8xf32>
    %67 = tpu.matmul %66, %53, %cst_21 {dimension_numbers = #tpu.dot_dimension_numbers<[1], [0], [0], [1], [0, 0, 1, 1], [], []>} : vector<16x16xbf16>, vector<16x8xbf16>, vector<16x8xf32> -> vector<16x8xf32>
    %68 = vector.extract_strided_slice %27 {offsets = [0, 16], sizes = [16, 8], strides = [1, 1]} : vector<16x96xf32> to vector<16x8xf32>
    %69 = arith.truncf %68 : vector<16x8xf32> to vector<16x8xbf16>
    %70 = vector.extract_strided_slice %27 {offsets = [0, 48], sizes = [16, 8], strides = [1, 1]} : vector<16x96xf32> to vector<16x8xf32>
    %71 = arith.truncf %70 : vector<16x8xf32> to vector<16x8xbf16>
    %72 = vector.extract_strided_slice %27 {offsets = [0, 80], sizes = [16, 8], strides = [1, 1]} : vector<16x96xf32> to vector<16x8xf32>
    %73 = arith.truncf %72 : vector<16x8xf32> to vector<16x8xbf16>
    %cst_22 = arith.constant dense<0.000000e+00> : vector<16x16xf32>
    %74 = tpu.matmul %69, %71, %cst_22 {dimension_numbers = #tpu.dot_dimension_numbers<[1], [1], [0], [0], [0, 0, 1, 0], [], []>} : vector<16x8xbf16>, vector<16x8xbf16>, vector<16x16xf32> -> vector<16x16xf32>
    %75 = arith.addf %74, %0 : vector<16x16xf32>
    %cst_23 = arith.constant dense<0xFF800000> : vector<16xf32>
    %76 = vector.multi_reduction <maximumf>, %75, %cst_23 [1] : vector<16x16xf32> to vector<16xf32>
    %77 = vector.shape_cast %76 : vector<16xf32> to vector<16x1xf32>
    %78 = vector.broadcast %77 : vector<16x1xf32> to vector<16x16xf32>
    %79 = arith.subf %75, %78 : vector<16x16xf32>
    %80 = math.exp %79 : vector<16x16xf32>
    %cst_24 = arith.constant dense<0.000000e+00> : vector<16xf32>
    %81 = vector.multi_reduction <add>, %80, %cst_24 [1] : vector<16x16xf32> to vector<16xf32>
    %82 = vector.shape_cast %81 : vector<16xf32> to vector<16x1xf32>
    %83 = tpu.reciprocal %82 {approx = true} : vector<16x1xf32> -> vector<16x1xf32>
    %84 = vector.broadcast %83 : vector<16x1xf32> to vector<16x16xf32>
    %85 = arith.mulf %80, %84 : vector<16x16xf32>
    %86 = arith.truncf %85 : vector<16x16xf32> to vector<16x16xbf16>
    %cst_25 = arith.constant dense<0.000000e+00> : vector<16x8xf32>
    %87 = tpu.matmul %86, %73, %cst_25 {dimension_numbers = #tpu.dot_dimension_numbers<[1], [0], [0], [1], [0, 0, 1, 1], [], []>} : vector<16x16xbf16>, vector<16x8xbf16>, vector<16x8xf32> -> vector<16x8xf32>
    %88 = vector.extract_strided_slice %27 {offsets = [0, 24], sizes = [16, 8], strides = [1, 1]} : vector<16x96xf32> to vector<16x8xf32>
    %89 = arith.truncf %88 : vector<16x8xf32> to vector<16x8xbf16>
    %90 = vector.extract_strided_slice %27 {offsets = [0, 56], sizes = [16, 8], strides = [1, 1]} : vector<16x96xf32> to vector<16x8xf32>
    %91 = arith.truncf %90 : vector<16x8xf32> to vector<16x8xbf16>
    %92 = vector.extract_strided_slice %27 {offsets = [0, 88], sizes = [16, 8], strides = [1, 1]} : vector<16x96xf32> to vector<16x8xf32>
    %93 = arith.truncf %92 : vector<16x8xf32> to vector<16x8xbf16>
    %cst_26 = arith.constant dense<0.000000e+00> : vector<16x16xf32>
    %94 = tpu.matmul %89, %91, %cst_26 {dimension_numbers = #tpu.dot_dimension_numbers<[1], [1], [0], [0], [0, 0, 1, 0], [], []>} : vector<16x8xbf16>, vector<16x8xbf16>, vector<16x16xf32> -> vector<16x16xf32>
    %95 = arith.addf %94, %0 : vector<16x16xf32>
    %cst_27 = arith.constant dense<0xFF800000> : vector<16xf32>
    %96 = vector.multi_reduction <maximumf>, %95, %cst_27 [1] : vector<16x16xf32> to vector<16xf32>
    %97 = vector.shape_cast %96 : vector<16xf32> to vector<16x1xf32>
    %98 = vector.broadcast %97 : vector<16x1xf32> to vector<16x16xf32>
    %99 = arith.subf %95, %98 : vector<16x16xf32>
    %100 = math.exp %99 : vector<16x16xf32>
    %cst_28 = arith.constant dense<0.000000e+00> : vector<16xf32>
    %101 = vector.multi_reduction <add>, %100, %cst_28 [1] : vector<16x16xf32> to vector<16xf32>
    %102 = vector.shape_cast %101 : vector<16xf32> to vector<16x1xf32>
    %103 = tpu.reciprocal %102 {approx = true} : vector<16x1xf32> -> vector<16x1xf32>
    %104 = vector.broadcast %103 : vector<16x1xf32> to vector<16x16xf32>
    %105 = arith.mulf %100, %104 : vector<16x16xf32>
    %106 = arith.truncf %105 : vector<16x16xf32> to vector<16x16xbf16>
    %cst_29 = arith.constant dense<0.000000e+00> : vector<16x8xf32>
    %107 = tpu.matmul %106, %93, %cst_29 {dimension_numbers = #tpu.dot_dimension_numbers<[1], [0], [0], [1], [0, 0, 1, 1], [], []>} : vector<16x16xbf16>, vector<16x8xbf16>, vector<16x8xf32> -> vector<16x8xf32>
    %108 = tpu.concatenate %47, %67, %87, %107 in 1 : vector<16x8xf32>, vector<16x8xf32>, vector<16x8xf32>, vector<16x8xf32> -> vector<16x32xf32>
    %109 = arith.truncf %108 : vector<16x32xf32> to vector<16x32xbf16>
    %c0_30 = arith.constant 0 : index
    %c0_31 = arith.constant 0 : index
    %c0_32 = arith.constant 0 : index
    %110 = vector.load %arg4[%c0_30, %c0_31, %c0_32] : memref<2x32x32xbf16, #tpu.memory_space<vmem>>, vector<1x32x32xbf16>
    %111 = vector.shape_cast %110 : vector<1x32x32xbf16> to vector<32x32xbf16>
    %cst_33 = arith.constant dense<0.000000e+00> : vector<16x32xf32>
    %112 = tpu.matmul %109, %111, %cst_33 {dimension_numbers = #tpu.dot_dimension_numbers<[1], [0], [0], [1], [0, 0, 1, 1], [], []>} : vector<16x32xbf16>, vector<32x32xbf16>, vector<16x32xf32> -> vector<16x32xf32>
    %113 = arith.addf %1, %112 : vector<16x32xf32>
    %c0_34 = arith.constant 0 : index
    %c0_35 = arith.constant 0 : index
    %c0_36 = arith.constant 0 : index
    %114 = vector.load %arg5[%c0_34, %c0_35, %c0_36] : memref<2x1x32xf32, #tpu.memory_space<vmem>>, vector<1x1x32xf32>
    %115 = vector.shape_cast %114 : vector<1x1x32xf32> to vector<1x32xf32>
    %116 = vector.broadcast %115 : vector<1x32xf32> to vector<16x32xf32>
    %117 = arith.addf %113, %116 : vector<16x32xf32>
    %cst_37 = arith.constant dense<0.000000e+00> : vector<16xf32>
    %118 = vector.multi_reduction <add>, %117, %cst_37 [1] : vector<16x32xf32> to vector<16xf32>
    %119 = vector.shape_cast %118 : vector<16xf32> to vector<16x1xf32>
    %cst_38 = arith.constant 3.200000e+01 : f32
    %120 = vector.broadcast %cst_38 : f32 to vector<16x1xf32>
    %121 = arith.divf %119, %120 : vector<16x1xf32>
    %122 = vector.broadcast %121 : vector<16x1xf32> to vector<16x32xf32>
    %123 = arith.subf %117, %122 : vector<16x32xf32>
    %124 = arith.mulf %123, %123 : vector<16x32xf32>
    %cst_39 = arith.constant dense<0.000000e+00> : vector<16xf32>
    %125 = vector.multi_reduction <add>, %124, %cst_39 [1] : vector<16x32xf32> to vector<16xf32>
    %126 = vector.shape_cast %125 : vector<16xf32> to vector<16x1xf32>
    %cst_40 = arith.constant 3.200000e+01 : f32
    %127 = vector.broadcast %cst_40 : f32 to vector<16x1xf32>
    %128 = arith.divf %126, %127 : vector<16x1xf32>
    %129 = vector.broadcast %121 : vector<16x1xf32> to vector<16x32xf32>
    %130 = arith.subf %117, %129 : vector<16x32xf32>
    %cst_41 = arith.constant 9.99999974E-6 : f32
    %131 = vector.broadcast %cst_41 : f32 to vector<16x1xf32>
    %132 = arith.addf %128, %131 : vector<16x1xf32>
    %133 = math.rsqrt %132 : vector<16x1xf32>
    %134 = vector.broadcast %133 : vector<16x1xf32> to vector<16x32xf32>
    %135 = arith.mulf %130, %134 : vector<16x32xf32>
    %136 = arith.truncf %135 : vector<16x32xf32> to vector<16x32xbf16>
    %c0_42 = arith.constant 0 : index
    %c0_43 = arith.constant 0 : index
    %c0_44 = arith.constant 0 : index
    %137 = vector.load %arg6[%c0_42, %c0_43, %c0_44] : memref<2x32x128xbf16, #tpu.memory_space<vmem>>, vector<1x32x128xbf16>
    %138 = vector.shape_cast %137 : vector<1x32x128xbf16> to vector<32x128xbf16>
    %cst_45 = arith.constant dense<0.000000e+00> : vector<16x128xf32>
    %139 = tpu.matmul %136, %138, %cst_45 {dimension_numbers = #tpu.dot_dimension_numbers<[1], [0], [0], [1], [0, 0, 1, 1], [], []>} : vector<16x32xbf16>, vector<32x128xbf16>, vector<16x128xf32> -> vector<16x128xf32>
    %c0_46 = arith.constant 0 : index
    %c0_47 = arith.constant 0 : index
    %c0_48 = arith.constant 0 : index
    %140 = vector.load %arg7[%c0_46, %c0_47, %c0_48] : memref<2x1x128xf32, #tpu.memory_space<vmem>>, vector<1x1x128xf32>
    %141 = vector.shape_cast %140 : vector<1x1x128xf32> to vector<1x128xf32>
    %142 = vector.broadcast %141 : vector<1x128xf32> to vector<16x128xf32>
    %143 = arith.addf %139, %142 : vector<16x128xf32>
    %cst_49 = arith.constant 5.000000e-01 : f32
    %144 = vector.broadcast %cst_49 : f32 to vector<16x128xf32>
    %145 = arith.mulf %144, %143 : vector<16x128xf32>
    %cst_50 = arith.constant 4.471500e-02 : f32
    %146 = vector.broadcast %cst_50 : f32 to vector<16x128xf32>
    %147 = arith.mulf %146, %143 : vector<16x128xf32>
    %148 = arith.mulf %147, %143 : vector<16x128xf32>
    %149 = arith.mulf %148, %143 : vector<16x128xf32>
    %150 = arith.addf %143, %149 : vector<16x128xf32>
    %cst_51 = arith.constant 0.797884583 : f32
    %151 = vector.broadcast %cst_51 : f32 to vector<16x128xf32>
    %152 = arith.mulf %151, %150 : vector<16x128xf32>
    %153 = math.tanh %152 : vector<16x128xf32>
    %cst_52 = arith.constant 1.000000e+00 : f32
    %154 = vector.broadcast %cst_52 : f32 to vector<16x128xf32>
    %155 = arith.addf %154, %153 : vector<16x128xf32>
    %156 = arith.mulf %145, %155 : vector<16x128xf32>
    %157 = arith.truncf %156 : vector<16x128xf32> to vector<16x128xbf16>
    %c0_53 = arith.constant 0 : index
    %c0_54 = arith.constant 0 : index
    %c0_55 = arith.constant 0 : index
    %158 = vector.load %arg8[%c0_53, %c0_54, %c0_55] : memref<2x128x32xbf16, #tpu.memory_space<vmem>>, vector<1x128x32xbf16>
    %159 = vector.shape_cast %158 : vector<1x128x32xbf16> to vector<128x32xbf16>
    %cst_56 = arith.constant dense<0.000000e+00> : vector<16x32xf32>
    %160 = tpu.matmul %157, %159, %cst_56 {dimension_numbers = #tpu.dot_dimension_numbers<[1], [0], [0], [1], [0, 0, 1, 1], [], []>} : vector<16x128xbf16>, vector<128x32xbf16>, vector<16x32xf32> -> vector<16x32xf32>
    %161 = arith.addf %117, %160 : vector<16x32xf32>
    %c0_57 = arith.constant 0 : index
    %c0_58 = arith.constant 0 : index
    %c0_59 = arith.constant 0 : index
    %162 = vector.load %arg9[%c0_57, %c0_58, %c0_59] : memref<2x1x32xf32, #tpu.memory_space<vmem>>, vector<1x1x32xf32>
    %163 = vector.shape_cast %162 : vector<1x1x32xf32> to vector<1x32xf32>
    %164 = vector.broadcast %163 : vector<1x32xf32> to vector<16x32xf32>
    %165 = arith.addf %161, %164 : vector<16x32xf32>
    %cst_60 = arith.constant dense<0.000000e+00> : vector<16xf32>
    %166 = vector.multi_reduction <add>, %165, %cst_60 [1] : vector<16x32xf32> to vector<16xf32>
    %167 = vector.shape_cast %166 : vector<16xf32> to vector<16x1xf32>
    %cst_61 = arith.constant 3.200000e+01 : f32
    %168 = vector.broadcast %cst_61 : f32 to vector<16x1xf32>
    %169 = arith.divf %167, %168 : vector<16x1xf32>
    %170 = vector.broadcast %169 : vector<16x1xf32> to vector<16x32xf32>
    %171 = arith.subf %165, %170 : vector<16x32xf32>
    %172 = arith.mulf %171, %171 : vector<16x32xf32>
    %cst_62 = arith.constant dense<0.000000e+00> : vector<16xf32>
    %173 = vector.multi_reduction <add>, %172, %cst_62 [1] : vector<16x32xf32> to vector<16xf32>
    %174 = vector.shape_cast %173 : vector<16xf32> to vector<16x1xf32>
    %cst_63 = arith.constant 3.200000e+01 : f32
    %175 = vector.broadcast %cst_63 : f32 to vector<16x1xf32>
    %176 = arith.divf %174, %175 : vector<16x1xf32>
    %177 = vector.broadcast %169 : vector<16x1xf32> to vector<16x32xf32>
    %178 = arith.subf %165, %177 : vector<16x32xf32>
    %cst_64 = arith.constant 9.99999974E-6 : f32
    %179 = vector.broadcast %cst_64 : f32 to vector<16x1xf32>
    %180 = arith.addf %176, %179 : vector<16x1xf32>
    %181 = math.rsqrt %180 : vector<16x1xf32>
    %182 = vector.broadcast %181 : vector<16x1xf32> to vector<16x32xf32>
    %183 = arith.mulf %178, %182 : vector<16x32xf32>
    %184 = arith.truncf %183 : vector<16x32xf32> to vector<16x32xbf16>
    %c1 = arith.constant 1 : index
    %c0_65 = arith.constant 0 : index
    %c0_66 = arith.constant 0 : index
    %185 = vector.load %arg2[%c1, %c0_65, %c0_66] : memref<2x32x96xbf16, #tpu.memory_space<vmem>>, vector<1x32x96xbf16>
    %186 = vector.shape_cast %185 : vector<1x32x96xbf16> to vector<32x96xbf16>
    %cst_67 = arith.constant dense<0.000000e+00> : vector<16x96xf32>
    %187 = tpu.matmul %184, %186, %cst_67 {dimension_numbers = #tpu.dot_dimension_numbers<[1], [0], [0], [1], [0, 0, 1, 1], [], []>} : vector<16x32xbf16>, vector<32x96xbf16>, vector<16x96xf32> -> vector<16x96xf32>
    %c1_68 = arith.constant 1 : index
    %c0_69 = arith.constant 0 : index
    %c0_70 = arith.constant 0 : index
    %188 = vector.load %arg3[%c1_68, %c0_69, %c0_70] : memref<2x1x96xf32, #tpu.memory_space<vmem>>, vector<1x1x96xf32>
    %189 = vector.shape_cast %188 : vector<1x1x96xf32> to vector<1x96xf32>
    %190 = vector.broadcast %189 : vector<1x96xf32> to vector<16x96xf32>
    %191 = arith.addf %187, %190 : vector<16x96xf32>
    %192 = vector.extract_strided_slice %191 {offsets = [0, 0], sizes = [16, 8], strides = [1, 1]} : vector<16x96xf32> to vector<16x8xf32>
    %193 = arith.truncf %192 : vector<16x8xf32> to vector<16x8xbf16>
    %194 = vector.extract_strided_slice %191 {offsets = [0, 32], sizes = [16, 8], strides = [1, 1]} : vector<16x96xf32> to vector<16x8xf32>
    %195 = arith.truncf %194 : vector<16x8xf32> to vector<16x8xbf16>
    %196 = vector.extract_strided_slice %191 {offsets = [0, 64], sizes = [16, 8], strides = [1, 1]} : vector<16x96xf32> to vector<16x8xf32>
    %197 = arith.truncf %196 : vector<16x8xf32> to vector<16x8xbf16>
    %cst_71 = arith.constant dense<0.000000e+00> : vector<16x16xf32>
    %198 = tpu.matmul %193, %195, %cst_71 {dimension_numbers = #tpu.dot_dimension_numbers<[1], [1], [0], [0], [0, 0, 1, 0], [], []>} : vector<16x8xbf16>, vector<16x8xbf16>, vector<16x16xf32> -> vector<16x16xf32>
    %199 = arith.addf %198, %0 : vector<16x16xf32>
    %cst_72 = arith.constant dense<0xFF800000> : vector<16xf32>
    %200 = vector.multi_reduction <maximumf>, %199, %cst_72 [1] : vector<16x16xf32> to vector<16xf32>
    %201 = vector.shape_cast %200 : vector<16xf32> to vector<16x1xf32>
    %202 = vector.broadcast %201 : vector<16x1xf32> to vector<16x16xf32>
    %203 = arith.subf %199, %202 : vector<16x16xf32>
    %204 = math.exp %203 : vector<16x16xf32>
    %cst_73 = arith.constant dense<0.000000e+00> : vector<16xf32>
    %205 = vector.multi_reduction <add>, %204, %cst_73 [1] : vector<16x16xf32> to vector<16xf32>
    %206 = vector.shape_cast %205 : vector<16xf32> to vector<16x1xf32>
    %207 = tpu.reciprocal %206 {approx = true} : vector<16x1xf32> -> vector<16x1xf32>
    %208 = vector.broadcast %207 : vector<16x1xf32> to vector<16x16xf32>
    %209 = arith.mulf %204, %208 : vector<16x16xf32>
    %210 = arith.truncf %209 : vector<16x16xf32> to vector<16x16xbf16>
    %cst_74 = arith.constant dense<0.000000e+00> : vector<16x8xf32>
    %211 = tpu.matmul %210, %197, %cst_74 {dimension_numbers = #tpu.dot_dimension_numbers<[1], [0], [0], [1], [0, 0, 1, 1], [], []>} : vector<16x16xbf16>, vector<16x8xbf16>, vector<16x8xf32> -> vector<16x8xf32>
    %212 = vector.extract_strided_slice %191 {offsets = [0, 8], sizes = [16, 8], strides = [1, 1]} : vector<16x96xf32> to vector<16x8xf32>
    %213 = arith.truncf %212 : vector<16x8xf32> to vector<16x8xbf16>
    %214 = vector.extract_strided_slice %191 {offsets = [0, 40], sizes = [16, 8], strides = [1, 1]} : vector<16x96xf32> to vector<16x8xf32>
    %215 = arith.truncf %214 : vector<16x8xf32> to vector<16x8xbf16>
    %216 = vector.extract_strided_slice %191 {offsets = [0, 72], sizes = [16, 8], strides = [1, 1]} : vector<16x96xf32> to vector<16x8xf32>
    %217 = arith.truncf %216 : vector<16x8xf32> to vector<16x8xbf16>
    %cst_75 = arith.constant dense<0.000000e+00> : vector<16x16xf32>
    %218 = tpu.matmul %213, %215, %cst_75 {dimension_numbers = #tpu.dot_dimension_numbers<[1], [1], [0], [0], [0, 0, 1, 0], [], []>} : vector<16x8xbf16>, vector<16x8xbf16>, vector<16x16xf32> -> vector<16x16xf32>
    %219 = arith.addf %218, %0 : vector<16x16xf32>
    %cst_76 = arith.constant dense<0xFF800000> : vector<16xf32>
    %220 = vector.multi_reduction <maximumf>, %219, %cst_76 [1] : vector<16x16xf32> to vector<16xf32>
    %221 = vector.shape_cast %220 : vector<16xf32> to vector<16x1xf32>
    %222 = vector.broadcast %221 : vector<16x1xf32> to vector<16x16xf32>
    %223 = arith.subf %219, %222 : vector<16x16xf32>
    %224 = math.exp %223 : vector<16x16xf32>
    %cst_77 = arith.constant dense<0.000000e+00> : vector<16xf32>
    %225 = vector.multi_reduction <add>, %224, %cst_77 [1] : vector<16x16xf32> to vector<16xf32>
    %226 = vector.shape_cast %225 : vector<16xf32> to vector<16x1xf32>
    %227 = tpu.reciprocal %226 {approx = true} : vector<16x1xf32> -> vector<16x1xf32>
    %228 = vector.broadcast %227 : vector<16x1xf32> to vector<16x16xf32>
    %229 = arith.mulf %224, %228 : vector<16x16xf32>
    %230 = arith.truncf %229 : vector<16x16xf32> to vector<16x16xbf16>
    %cst_78 = arith.constant dense<0.000000e+00> : vector<16x8xf32>
    %231 = tpu.matmul %230, %217, %cst_78 {dimension_numbers = #tpu.dot_dimension_numbers<[1], [0], [0], [1], [0, 0, 1, 1], [], []>} : vector<16x16xbf16>, vector<16x8xbf16>, vector<16x8xf32> -> vector<16x8xf32>
    %232 = vector.extract_strided_slice %191 {offsets = [0, 16], sizes = [16, 8], strides = [1, 1]} : vector<16x96xf32> to vector<16x8xf32>
    %233 = arith.truncf %232 : vector<16x8xf32> to vector<16x8xbf16>
    %234 = vector.extract_strided_slice %191 {offsets = [0, 48], sizes = [16, 8], strides = [1, 1]} : vector<16x96xf32> to vector<16x8xf32>
    %235 = arith.truncf %234 : vector<16x8xf32> to vector<16x8xbf16>
    %236 = vector.extract_strided_slice %191 {offsets = [0, 80], sizes = [16, 8], strides = [1, 1]} : vector<16x96xf32> to vector<16x8xf32>
    %237 = arith.truncf %236 : vector<16x8xf32> to vector<16x8xbf16>
    %cst_79 = arith.constant dense<0.000000e+00> : vector<16x16xf32>
    %238 = tpu.matmul %233, %235, %cst_79 {dimension_numbers = #tpu.dot_dimension_numbers<[1], [1], [0], [0], [0, 0, 1, 0], [], []>} : vector<16x8xbf16>, vector<16x8xbf16>, vector<16x16xf32> -> vector<16x16xf32>
    %239 = arith.addf %238, %0 : vector<16x16xf32>
    %cst_80 = arith.constant dense<0xFF800000> : vector<16xf32>
    %240 = vector.multi_reduction <maximumf>, %239, %cst_80 [1] : vector<16x16xf32> to vector<16xf32>
    %241 = vector.shape_cast %240 : vector<16xf32> to vector<16x1xf32>
    %242 = vector.broadcast %241 : vector<16x1xf32> to vector<16x16xf32>
    %243 = arith.subf %239, %242 : vector<16x16xf32>
    %244 = math.exp %243 : vector<16x16xf32>
    %cst_81 = arith.constant dense<0.000000e+00> : vector<16xf32>
    %245 = vector.multi_reduction <add>, %244, %cst_81 [1] : vector<16x16xf32> to vector<16xf32>
    %246 = vector.shape_cast %245 : vector<16xf32> to vector<16x1xf32>
    %247 = tpu.reciprocal %246 {approx = true} : vector<16x1xf32> -> vector<16x1xf32>
    %248 = vector.broadcast %247 : vector<16x1xf32> to vector<16x16xf32>
    %249 = arith.mulf %244, %248 : vector<16x16xf32>
    %250 = arith.truncf %249 : vector<16x16xf32> to vector<16x16xbf16>
    %cst_82 = arith.constant dense<0.000000e+00> : vector<16x8xf32>
    %251 = tpu.matmul %250, %237, %cst_82 {dimension_numbers = #tpu.dot_dimension_numbers<[1], [0], [0], [1], [0, 0, 1, 1], [], []>} : vector<16x16xbf16>, vector<16x8xbf16>, vector<16x8xf32> -> vector<16x8xf32>
    %252 = vector.extract_strided_slice %191 {offsets = [0, 24], sizes = [16, 8], strides = [1, 1]} : vector<16x96xf32> to vector<16x8xf32>
    %253 = arith.truncf %252 : vector<16x8xf32> to vector<16x8xbf16>
    %254 = vector.extract_strided_slice %191 {offsets = [0, 56], sizes = [16, 8], strides = [1, 1]} : vector<16x96xf32> to vector<16x8xf32>
    %255 = arith.truncf %254 : vector<16x8xf32> to vector<16x8xbf16>
    %256 = vector.extract_strided_slice %191 {offsets = [0, 88], sizes = [16, 8], strides = [1, 1]} : vector<16x96xf32> to vector<16x8xf32>
    %257 = arith.truncf %256 : vector<16x8xf32> to vector<16x8xbf16>
    %cst_83 = arith.constant dense<0.000000e+00> : vector<16x16xf32>
    %258 = tpu.matmul %253, %255, %cst_83 {dimension_numbers = #tpu.dot_dimension_numbers<[1], [1], [0], [0], [0, 0, 1, 0], [], []>} : vector<16x8xbf16>, vector<16x8xbf16>, vector<16x16xf32> -> vector<16x16xf32>
    %259 = arith.addf %258, %0 : vector<16x16xf32>
    %cst_84 = arith.constant dense<0xFF800000> : vector<16xf32>
    %260 = vector.multi_reduction <maximumf>, %259, %cst_84 [1] : vector<16x16xf32> to vector<16xf32>
    %261 = vector.shape_cast %260 : vector<16xf32> to vector<16x1xf32>
    %262 = vector.broadcast %261 : vector<16x1xf32> to vector<16x16xf32>
    %263 = arith.subf %259, %262 : vector<16x16xf32>
    %264 = math.exp %263 : vector<16x16xf32>
    %cst_85 = arith.constant dense<0.000000e+00> : vector<16xf32>
    %265 = vector.multi_reduction <add>, %264, %cst_85 [1] : vector<16x16xf32> to vector<16xf32>
    %266 = vector.shape_cast %265 : vector<16xf32> to vector<16x1xf32>
    %267 = tpu.reciprocal %266 {approx = true} : vector<16x1xf32> -> vector<16x1xf32>
    %268 = vector.broadcast %267 : vector<16x1xf32> to vector<16x16xf32>
    %269 = arith.mulf %264, %268 : vector<16x16xf32>
    %270 = arith.truncf %269 : vector<16x16xf32> to vector<16x16xbf16>
    %cst_86 = arith.constant dense<0.000000e+00> : vector<16x8xf32>
    %271 = tpu.matmul %270, %257, %cst_86 {dimension_numbers = #tpu.dot_dimension_numbers<[1], [0], [0], [1], [0, 0, 1, 1], [], []>} : vector<16x16xbf16>, vector<16x8xbf16>, vector<16x8xf32> -> vector<16x8xf32>
    %272 = tpu.concatenate %211, %231, %251, %271 in 1 : vector<16x8xf32>, vector<16x8xf32>, vector<16x8xf32>, vector<16x8xf32> -> vector<16x32xf32>
    %273 = arith.truncf %272 : vector<16x32xf32> to vector<16x32xbf16>
    %c1_87 = arith.constant 1 : index
    %c0_88 = arith.constant 0 : index
    %c0_89 = arith.constant 0 : index
    %274 = vector.load %arg4[%c1_87, %c0_88, %c0_89] : memref<2x32x32xbf16, #tpu.memory_space<vmem>>, vector<1x32x32xbf16>
    %275 = vector.shape_cast %274 : vector<1x32x32xbf16> to vector<32x32xbf16>
    %cst_90 = arith.constant dense<0.000000e+00> : vector<16x32xf32>
    %276 = tpu.matmul %273, %275, %cst_90 {dimension_numbers = #tpu.dot_dimension_numbers<[1], [0], [0], [1], [0, 0, 1, 1], [], []>} : vector<16x32xbf16>, vector<32x32xbf16>, vector<16x32xf32> -> vector<16x32xf32>
    %277 = arith.addf %165, %276 : vector<16x32xf32>
    %c1_91 = arith.constant 1 : index
    %c0_92 = arith.constant 0 : index
    %c0_93 = arith.constant 0 : index
    %278 = vector.load %arg5[%c1_91, %c0_92, %c0_93] : memref<2x1x32xf32, #tpu.memory_space<vmem>>, vector<1x1x32xf32>
    %279 = vector.shape_cast %278 : vector<1x1x32xf32> to vector<1x32xf32>
    %280 = vector.broadcast %279 : vector<1x32xf32> to vector<16x32xf32>
    %281 = arith.addf %277, %280 : vector<16x32xf32>
    %cst_94 = arith.constant dense<0.000000e+00> : vector<16xf32>
    %282 = vector.multi_reduction <add>, %281, %cst_94 [1] : vector<16x32xf32> to vector<16xf32>
    %283 = vector.shape_cast %282 : vector<16xf32> to vector<16x1xf32>
    %cst_95 = arith.constant 3.200000e+01 : f32
    %284 = vector.broadcast %cst_95 : f32 to vector<16x1xf32>
    %285 = arith.divf %283, %284 : vector<16x1xf32>
    %286 = vector.broadcast %285 : vector<16x1xf32> to vector<16x32xf32>
    %287 = arith.subf %281, %286 : vector<16x32xf32>
    %288 = arith.mulf %287, %287 : vector<16x32xf32>
    %cst_96 = arith.constant dense<0.000000e+00> : vector<16xf32>
    %289 = vector.multi_reduction <add>, %288, %cst_96 [1] : vector<16x32xf32> to vector<16xf32>
    %290 = vector.shape_cast %289 : vector<16xf32> to vector<16x1xf32>
    %cst_97 = arith.constant 3.200000e+01 : f32
    %291 = vector.broadcast %cst_97 : f32 to vector<16x1xf32>
    %292 = arith.divf %290, %291 : vector<16x1xf32>
    %293 = vector.broadcast %285 : vector<16x1xf32> to vector<16x32xf32>
    %294 = arith.subf %281, %293 : vector<16x32xf32>
    %cst_98 = arith.constant 9.99999974E-6 : f32
    %295 = vector.broadcast %cst_98 : f32 to vector<16x1xf32>
    %296 = arith.addf %292, %295 : vector<16x1xf32>
    %297 = math.rsqrt %296 : vector<16x1xf32>
    %298 = vector.broadcast %297 : vector<16x1xf32> to vector<16x32xf32>
    %299 = arith.mulf %294, %298 : vector<16x32xf32>
    %300 = arith.truncf %299 : vector<16x32xf32> to vector<16x32xbf16>
    %c1_99 = arith.constant 1 : index
    %c0_100 = arith.constant 0 : index
    %c0_101 = arith.constant 0 : index
    %301 = vector.load %arg6[%c1_99, %c0_100, %c0_101] : memref<2x32x128xbf16, #tpu.memory_space<vmem>>, vector<1x32x128xbf16>
    %302 = vector.shape_cast %301 : vector<1x32x128xbf16> to vector<32x128xbf16>
    %cst_102 = arith.constant dense<0.000000e+00> : vector<16x128xf32>
    %303 = tpu.matmul %300, %302, %cst_102 {dimension_numbers = #tpu.dot_dimension_numbers<[1], [0], [0], [1], [0, 0, 1, 1], [], []>} : vector<16x32xbf16>, vector<32x128xbf16>, vector<16x128xf32> -> vector<16x128xf32>
    %c1_103 = arith.constant 1 : index
    %c0_104 = arith.constant 0 : index
    %c0_105 = arith.constant 0 : index
    %304 = vector.load %arg7[%c1_103, %c0_104, %c0_105] : memref<2x1x128xf32, #tpu.memory_space<vmem>>, vector<1x1x128xf32>
    %305 = vector.shape_cast %304 : vector<1x1x128xf32> to vector<1x128xf32>
    %306 = vector.broadcast %305 : vector<1x128xf32> to vector<16x128xf32>
    %307 = arith.addf %303, %306 : vector<16x128xf32>
    %cst_106 = arith.constant 5.000000e-01 : f32
    %308 = vector.broadcast %cst_106 : f32 to vector<16x128xf32>
    %309 = arith.mulf %308, %307 : vector<16x128xf32>
    %cst_107 = arith.constant 4.471500e-02 : f32
    %310 = vector.broadcast %cst_107 : f32 to vector<16x128xf32>
    %311 = arith.mulf %310, %307 : vector<16x128xf32>
    %312 = arith.mulf %311, %307 : vector<16x128xf32>
    %313 = arith.mulf %312, %307 : vector<16x128xf32>
    %314 = arith.addf %307, %313 : vector<16x128xf32>
    %cst_108 = arith.constant 0.797884583 : f32
    %315 = vector.broadcast %cst_108 : f32 to vector<16x128xf32>
    %316 = arith.mulf %315, %314 : vector<16x128xf32>
    %317 = math.tanh %316 : vector<16x128xf32>
    %cst_109 = arith.constant 1.000000e+00 : f32
    %318 = vector.broadcast %cst_109 : f32 to vector<16x128xf32>
    %319 = arith.addf %318, %317 : vector<16x128xf32>
    %320 = arith.mulf %309, %319 : vector<16x128xf32>
    %321 = arith.truncf %320 : vector<16x128xf32> to vector<16x128xbf16>
    %c1_110 = arith.constant 1 : index
    %c0_111 = arith.constant 0 : index
    %c0_112 = arith.constant 0 : index
    %322 = vector.load %arg8[%c1_110, %c0_111, %c0_112] : memref<2x128x32xbf16, #tpu.memory_space<vmem>>, vector<1x128x32xbf16>
    %323 = vector.shape_cast %322 : vector<1x128x32xbf16> to vector<128x32xbf16>
    %cst_113 = arith.constant dense<0.000000e+00> : vector<16x32xf32>
    %324 = tpu.matmul %321, %323, %cst_113 {dimension_numbers = #tpu.dot_dimension_numbers<[1], [0], [0], [1], [0, 0, 1, 1], [], []>} : vector<16x128xbf16>, vector<128x32xbf16>, vector<16x32xf32> -> vector<16x32xf32>
    %325 = arith.addf %281, %324 : vector<16x32xf32>
    %c1_114 = arith.constant 1 : index
    %c0_115 = arith.constant 0 : index
    %c0_116 = arith.constant 0 : index
    %326 = vector.load %arg9[%c1_114, %c0_115, %c0_116] : memref<2x1x32xf32, #tpu.memory_space<vmem>>, vector<1x1x32xf32>
    %327 = vector.shape_cast %326 : vector<1x1x32xf32> to vector<1x32xf32>
    %328 = vector.broadcast %327 : vector<1x32xf32> to vector<16x32xf32>
    %329 = arith.addf %325, %328 : vector<16x32xf32>
    %cst_117 = arith.constant dense<0.000000e+00> : vector<16xf32>
    %330 = vector.multi_reduction <add>, %329, %cst_117 [1] : vector<16x32xf32> to vector<16xf32>
    %331 = vector.shape_cast %330 : vector<16xf32> to vector<16x1xf32>
    %cst_118 = arith.constant 3.200000e+01 : f32
    %332 = vector.broadcast %cst_118 : f32 to vector<16x1xf32>
    %333 = arith.divf %331, %332 : vector<16x1xf32>
    %334 = vector.broadcast %333 : vector<16x1xf32> to vector<16x32xf32>
    %335 = arith.subf %329, %334 : vector<16x32xf32>
    %336 = arith.mulf %335, %335 : vector<16x32xf32>
    %cst_119 = arith.constant dense<0.000000e+00> : vector<16xf32>
    %337 = vector.multi_reduction <add>, %336, %cst_119 [1] : vector<16x32xf32> to vector<16xf32>
    %338 = vector.shape_cast %337 : vector<16xf32> to vector<16x1xf32>
    %cst_120 = arith.constant 3.200000e+01 : f32
    %339 = vector.broadcast %cst_120 : f32 to vector<16x1xf32>
    %340 = arith.divf %338, %339 : vector<16x1xf32>
    %341 = vector.broadcast %333 : vector<16x1xf32> to vector<16x32xf32>
    %342 = arith.subf %329, %341 : vector<16x32xf32>
    %cst_121 = arith.constant 9.99999974E-6 : f32
    %343 = vector.broadcast %cst_121 : f32 to vector<16x1xf32>
    %344 = arith.addf %340, %343 : vector<16x1xf32>
    %345 = math.rsqrt %344 : vector<16x1xf32>
    %346 = vector.broadcast %345 : vector<16x1xf32> to vector<16x32xf32>
    %347 = arith.mulf %342, %346 : vector<16x32xf32>
    %348 = arith.truncf %347 : vector<16x32xf32> to vector<16x32xbf16>
    %c0_122 = arith.constant 0 : index
    %c0_123 = arith.constant 0 : index
    %349 = vector.load %arg10[%c0_122, %c0_123] : memref<32x128xbf16, #tpu.memory_space<vmem>>, vector<32x128xbf16>
    %cst_124 = arith.constant dense<0.000000e+00> : vector<16x128xf32>
    %350 = tpu.matmul %348, %349, %cst_124 {dimension_numbers = #tpu.dot_dimension_numbers<[1], [0], [0], [1], [0, 0, 1, 1], [], []>} : vector<16x32xbf16>, vector<32x128xbf16>, vector<16x128xf32> -> vector<16x128xf32>
    %c0_125 = arith.constant 0 : index
    %c0_126 = arith.constant 0 : index
    %351 = vector.load %arg11[%c0_125, %c0_126] : memref<1x128xf32, #tpu.memory_space<vmem>>, vector<1x128xf32>
    %352 = vector.broadcast %351 : vector<1x128xf32> to vector<16x128xf32>
    %353 = arith.addf %350, %352 : vector<16x128xf32>
    %c0_127 = arith.constant 0 : index
    %c0_128 = arith.constant 0 : index
    %354 = vector.load %arg12[%c0_127, %c0_128] : memref<16x128xf32, #tpu.memory_space<vmem>>, vector<16x128xf32>
    tpu.vector_store %arg12[%c0_127, %c0_128], %353 {strides = array<i32>} : memref<16x128xf32, #tpu.memory_space<vmem>>, vector<16x128xf32>,
    return
  }
}

</mosaic_0001>

<bundles_post_ra>
// kernel: tpu_custom_call.1
= control target key start
LH: loop header
LB: loop body
LE: loop exit
PB: predicated region body
PF: predicated region fallthrough
CT: control target
= control target key end

     0   :  { %vm47_vm0 = vcmask 261120   ;;  %s2237_s0 = inlined_call_operand.vmem [shape: f32[16,32], index: 0, kind: input, shape index: {}]   ;;  %s2238_s1 = inlined_call_operand.vmem [shape: f32[16,16], index: 1, kind: input, shape index: {}]   ;;  %s2239_s2 = inlined_call_operand.vmem [shape: bf16[2,32,96], index: 2, kind: input, shape index: {}]   ;;  %s2240_s3 = inlined_call_operand.vmem [shape: f32[2,1,96], index: 3, kind: input, shape index: {}]   ;;  %s2241_s4 = inlined_call_operand.vmem [shape: bf16[2,32,32], index: 4, kind: input, shape index: {}]   ;;  %s2242_s5 = inlined_call_operand.vmem [shape: f32[2,1,32], index: 5, kind: input, shape index: {}]   ;;  %s2243_s6 = inlined_call_operand.vmem [shape: bf16[2,32,128], index: 6, kind: input, shape index: {}]   ;;  %s2244_s7 = inlined_call_operand.vmem [shape: f32[2,1,128], index: 7, kind: input, shape index: {}]   ;;  %s2245_s8 = inlined_call_operand.vmem [shape: bf16[2,128,32], index: 8, kind: input, shape index: {}]   ;;  %s2246_s9 = inlined_call_operand.vmem [shape: f32[2,1,32], index: 9, kind: input, shape index: {}]   ;;  %s2247_s10 = inlined_call_operand.vmem [shape: bf16[32,128], index: 10, kind: input, shape index: {}]   ;;  %s2248_s11 = inlined_call_operand.vmem [shape: f32[1,128], index: 11, kind: input, shape index: {}]   ;;  %s2249_s12 = inlined_call_operand.hbm [shape: f32[16,128], index: 12, kind: output, shape index: {}]  }
   0x1   :  { %v1852_v0 = vld [vmem:[%s2237_s0] sm:$0xff]  ;;  %v1859_v2 = vld [vmem:[%s2237_s0 + $0x8] sm:$0xff] }
   0x2   :  { %v48_v1 = vsel %vm47_vm0, %v1852_v0, 0.0 }
   0x3   :  { %49 = vadd.xlane.f32.xlu0 %v48_v1 }
   0x4   :  { %17 = vsyncpa [#allocation3], 0  ;;  %v51_v3 = vsel %vm47_vm0, %v1859_v2, 0.0  ;;  %v1767_v4 = vmov 32.0   ;;  %v1562_v21 = vld [vmem:[%s2239_s2 + $0x8] sm:$0xff]  ;;  %v1561_v22 = vld [vmem:[%s2239_s2] sm:$0xff] }
   0x5   :  { %1647 = vrcp.f32 %v1767_v4  ;;  %129 = vmatpush.bf16.msra.mxu0 %v1562_v21  ;;  %v1638_v47 = vld [vmem:[%s2240_s3] ss:$0 sm:$0xff]  ;;  %s1768_s30 = smov 72   ;;  %s1769_s13 = smov 96   ;;  %vm141_vm8 = vcmask 64512   ;;  %vm162_vm9 = vcmask 130048  }
   0x6   :  { %s1770_s14 = smov 88   ;;  %s1771_s15 = smov 120   ;;  %v1911_v63 = vld [vmem:[%s2238_s1] sm:$0xff]  ;;  %vm435_vm10 = vcmask 195584  }
   0x7   :  { %s1772_s16 = smov 104   ;;  %s1773_s17 = smov 80  }
   0x8   :  { %s1774_s18 = smov 112   ;;  %s1776_s23 = smov 64  }
   0x9   :  { %130 = vmatpush.bf16.msra.mxu0 %v1561_v22  ;;  %s2254_s24 = smov 40   ;;  %s1778_s0 = smov 48  }
   0xa   :  { %s2252_s25 = smov 8   ;;  %s2250_s26 = smov 16  }
   0xb   :  { %52 = vadd.xlane.f32.xlu0 %v51_v3  ;;  %v1648_v5 = vpop.eup %1647  ;;  %s2251_s27 = smov 24  }
   0xc   :  { %v55_v6 = vmul.f32 32.0, %v1648_v5  ;;  %vm59_vm1 = vweird.f32 %v1648_v5 }
   0xe   :  { %v56_v7 = vsub.f32 1.0, %v55_v6 }
  0x10   :  { %v57_v8 = vmul.f32 %v1648_v5, %v56_v7 }
  0x12   :  { %v58_v9 = vadd.f32 %v1648_v5, %v57_v8 }
  0x14   :  { %v1863_v10 = vsel %vm59_vm1, %v1648_v5, %v58_v9  ;;  %v1918_v5 = vld [vmem:[%s2238_s1 + $0x8] sm:$0xff]  ;;  %s1775_s1 = smov 56  }
  0x76   :  { %v50_v11 = vpop.xlane.xlu0 %49 }
  0x77   :  { %v61_v12 = vmul.f32 %v1863_v10, %v50_v11 }
  0x79   :  { %v63_v13 = vsub.f32 %v1852_v0, %v61_v12 }
  0x7b   :  { %v65_v14 = vmul.f32 %v63_v13, %v63_v13 }
  0x7d   :  { %v67_v15 = vsel %vm47_vm0, %v65_v14, 0.0 }
  0x7e   :  { %68 = vadd.xlane.f32.xlu1 %v67_v15  ;;  %v53_v16 = vpop.xlane.xlu0 %52 }
  0x7f   :  { %v62_v17 = vmul.f32 %v1863_v10, %v53_v16 }
  0x81   :  { %v64_v18 = vsub.f32 %v1859_v2, %v62_v17 }
  0x83   :  { %v66_v19 = vmul.f32 %v64_v18, %v64_v18 }
  0x85   :  { %v70_v20 = vsel %vm47_vm0, %v66_v19, 0.0 }
  0x86   :  { %71 = vadd.xlane.f32.xlu1 %v70_v20 }
  0xf1   :  { %v69_v23 = vpop.xlane.xlu1 %68 }
  0xf2   :  { %v73_v24 = vmul.f32 %v69_v23, %v1863_v10 }
  0xf4   :  { %v75_v25 = vadd.f32 1e-05, %v73_v24 }
  0xf6   :  { %1649 = vrsqrt.f32 %v75_v25  ;;  %vm83_vm3 = vweird.f32 %v75_v25 }
  0xf9   :  { %v72_v26 = vpop.xlane.xlu1 %71 }
  0xfa   :  { %v74_v27 = vmul.f32 %v72_v26, %v1863_v10 }
  0xfc   :  { %v1650_v28 = vpop.eup %1649  ;;  %v76_v29 = vadd.f32 1e-05, %v74_v27 }
  0xfd   :  { %v78_v30 = vmul.f32 %v1650_v28, %v75_v25  ;;  %vm84_vm2 = vweird.f32 %v1650_v28 }
  0xfe   :  { %1651 = vrsqrt.f32 %v76_v29  ;;  %vm85_vm5 = vmor %vm83_vm3, %vm84_vm2  ;;  %vm93_vm6 = vweird.f32 %v76_v29 }
  0xff   :  { %v79_v31 = vmul.f32 %v1650_v28, %v78_v30 }
 0x101   :  { %v80_v32 = vmul.f32 0.5, %v79_v31 }
 0x103   :  { %v81_v34 = vsub.f32 1.5, %v80_v32 }
 0x104   :  { %v1652_v33 = vpop.eup %1651 }
 0x105   :  { %v88_v35 = vmul.f32 %v1652_v33, %v76_v29  ;;  %v82_v37 = vmul.f32 %v1650_v28, %v81_v34  ;;  %vm94_vm4 = vweird.f32 %v1652_v33 }
 0x106   :  { %vm95_vm7 = vmor %vm93_vm6, %vm94_vm4 }
 0x107   :  { %v89_v36 = vmul.f32 %v1652_v33, %v88_v35  ;;  %v86_v41 = vsel %vm85_vm5, %v1650_v28, %v82_v37 }
 0x108   :  { %v97_v43 = vmul.f32 %v86_v41, %v63_v13 }
 0x109   :  { %v90_v38 = vmul.f32 0.5, %v89_v36 }
 0x10b   :  { %v91_v39 = vsub.f32 1.5, %v90_v38 }
 0x10d   :  { %v92_v40 = vmul.f32 %v1652_v33, %v91_v39 }
 0x10f   :  { %v96_v42 = vsel %vm95_vm7, %v1652_v33, %v92_v40 }
 0x110   :  { %v98_v44 = vmul.f32 %v96_v42, %v64_v18 }
 0x112   :  { %v99_v45 = vpack.c.bf16 %v98_v44, %v97_v43 }
 0x114   :  { %1394 = vmatmul.msk.bf16.vlgmr.msra.gmra.mxu0 %vm47_vm0, %v99_v45 }
 0x191   :  { %v132_v46 = vpop.f32.mrf.mxu0 }
 0x192   :  { %v133_v49 = vadd.f32 %v1638_v47, %v132_v46 }
 0x199   :  { %v134_v48 = vpop.f32.mrf.mxu0 }
 0x19a   :  { %v135_v50 = vadd.f32 %v1638_v47, %v134_v48 }
 0x19c   :  { %v1883_v51 = vpack.c.bf16 %v135_v50, %v133_v49 }
 0x19e   :  { %342 = vrot.lane.b32.xlu1 %v1883_v51, %s1768_s30  ;;  %139 = vrot.lane.b32.xlu0 %v1883_v51, %s1769_s13 }
 0x19f   :  { %208 = vrot.lane.b32.xlu2 %v1883_v51, %s1770_s14 }
 0x1a7   :  { %206 = vrot.lane.b32.xlu2 %v1883_v51, %s1771_s15 }
 0x1af   :  { %340 = vrot.lane.b32.xlu2 %v1883_v51, %s1772_s16 }
 0x1b7   :  { %275 = vrot.lane.b32.xlu2 %v1883_v51, %s1773_s17 }
 0x1bf   :  { %273 = vrot.lane.b32.xlu2 %v1883_v51, %s1774_s18 }
 0x1f9   :  { %v209_v52 = vpop.permute.xlu2 %208 }
 0x1fa   :  { %v214_v53 = vsel %vm141_vm8, %v209_v52, 0 }
 0x1fb   :  { %223 = vmatpush.bf16.xpose.msra.mxu3 %v214_v53 }
 0x201   :  { %v207_v54 = vpop.permute.xlu2 %206 }
 0x202   :  { %1397 = vmatmul.msk.bf16.vlgmr.msra.gmra.mxu3 %vm141_vm8, %v207_v54 }
 0x209   :  { %v341_v55 = vpop.permute.xlu2 %340 }
 0x210   :  { %v343_v56 = vpop.permute.xlu1 %342  ;;  %v140_v57 = vpop.permute.xlu0 %139 }
 0x211   :  { %v276_v58 = vpop.permute.xlu2 %275  ;;  %v146_v59 = vsel %vm141_vm8, %v140_v57, 0  ;;  %v348_v60 = vsel %vm141_vm8, %v343_v56, 0 }
 0x212   :  { %155 = vmatpush.bf16.xpose.msra.mxu1 %v146_v59  ;;  %v281_v61 = vsel %vm141_vm8, %v276_v58, 0  ;;  %357 = vmatpush.bf16.xpose.msrb.mxu3 %v348_v60 }
 0x213   :  { %290 = vmatpush.bf16.xpose.msrb.mxu0 %v281_v61 }
 0x219   :  { %v274_v62 = vpop.permute.xlu2 %273  ;;  %1395 = vmatmul.msk.bf16.vlgmr.msra.gmra.mxu1 %vm141_vm8, %v1883_v51  ;;  %1401 = vmatmul.msk.bf16.vlgmr.msrb.gmra.mxu3 %vm141_vm8, %v341_v55 }
 0x21a   :  { %1399 = vmatmul.msk.bf16.vlgmr.msrb.gmra.mxu0 %vm141_vm8, %v274_v62 }
 0x285   :  { %v225_v1 = vpop.f32.mrf.mxu3 }
 0x286   :  { %v226_v3 = vadd.f32 %v225_v1, %v1911_v63 }
 0x288   :  { %v230_v4 = vsel %vm162_vm9, %v226_v3, -inf }
 0x289   :  { %231 = vmax.xlane.f32.xlu0 %v230_v4 }
 0x28d   :  { %v227_v6 = vpop.f32.mrf.mxu3 }
 0x28e   :  { %v228_v7 = vadd.f32 %v227_v6, %v1918_v5 }
 0x290   :  { %v233_v8 = vsel %vm162_vm9, %v228_v7, -inf }
 0x291   :  { %234 = vmax.xlane.f32.xlu2 %v233_v8 }
 0x296   :  { %v157_v9 = vpop.f32.mrf.mxu1 }
 0x297   :  { %v158_v11 = vadd.f32 %v157_v9, %v1911_v63  ;;  %v292_v12 = vpop.f32.mrf.mxu0 }
 0x298   :  { %v1930_v23 = vadd.f32 %v292_v12, %v1911_v63 }
 0x299   :  { %v163_v13 = vsel %vm162_vm9, %v158_v11, -inf }
 0x29a   :  { %164 = vmax.xlane.f32.xlu1 %v163_v13  ;;  %v297_v27 = vsel %vm162_vm9, %v1930_v23, -inf }
 0x29c   :  { %v359_v14 = vpop.f32.mrf.mxu3 }
 0x29d   :  { %v360_v15 = vadd.f32 %v359_v14, %v1911_v63 }
 0x29e   :  { %v159_v16 = vpop.f32.mrf.mxu1 }
 0x29f   :  { %v160_v17 = vadd.f32 %v159_v16, %v1918_v5  ;;  %v364_v18 = vsel %vm162_vm9, %v360_v15, -inf  ;;  %v294_v19 = vpop.f32.mrf.mxu0 }
 0x2a0   :  { %365 = vmax.xlane.f32.xlu2 %v364_v18  ;;  %v295_v21 = vadd.f32 %v294_v19, %v1918_v5 }
 0x2a1   :  { %v166_v20 = vsel %vm162_vm9, %v160_v17, -inf }
 0x2a2   :  { %167 = vmax.xlane.f32.xlu0 %v166_v20  ;;  %v300_v25 = vsel %vm162_vm9, %v295_v21, -inf }
 0x2a4   :  { %v361_v22 = vpop.f32.mrf.mxu3 }
 0x2a5   :  { %v362_v24 = vadd.f32 %v361_v22, %v1918_v5 }
 0x2a7   :  { %v367_v26 = vsel %vm162_vm9, %v362_v24, -inf }
 0x2a8   :  { %301 = vmax.xlane.f32.xlu2 %v300_v25  ;;  %368 = vmax.xlane.f32.xlu1 %v367_v26 }
 0x2aa   :  { %298 = vmax.xlane.f32.xlu0 %v297_v27 }
 0x2fc   :  { %v232_v28 = vpop.xlane.xlu0 %231 }
 0x2fd   :  { %v236_v29 = vsub.f32 %v226_v3, %v232_v28 }
 0x2ff   :  { %v238_v30 = vmul.f32 1.442695, %v236_v29 }
 0x301   :  { %1653 = vpow2.f32 %v238_v30 }
 0x304   :  { %v235_v31 = vpop.xlane.xlu2 %234 }
 0x305   :  { %v237_v32 = vsub.f32 %v228_v7, %v235_v31 }
 0x307   :  { %v1937_v33 = vpop.eup %1653  ;;  %v240_v34 = vmul.f32 1.442695, %v237_v32 }
 0x308   :  { %v242_v35 = vsel %vm162_vm9, %v1937_v33, 0.0 }
 0x309   :  { %1655 = vpow2.f32 %v240_v34  ;;  %243 = vadd.xlane.f32.xlu1 %v242_v35 }
 0x30d   :  { %v165_v36 = vpop.xlane.xlu1 %164 }
 0x30e   :  { %v169_v37 = vsub.f32 %v158_v11, %v165_v36 }
 0x30f   :  { %v1656_v38 = vpop.eup %1655 }
 0x310   :  { %v171_v39 = vmul.f32 1.442695, %v169_v37  ;;  %v245_v40 = vsel %vm162_vm9, %v1656_v38, 0.0 }
 0x311   :  { %246 = vadd.xlane.f32.xlu0 %v245_v40 }
 0x312   :  { %1657 = vpow2.f32 %v171_v39 }
 0x313   :  { %v366_v41 = vpop.xlane.xlu2 %365 }
 0x314   :  { %v370_v52 = vsub.f32 %v360_v15, %v366_v41 }
 0x315   :  { %v168_v42 = vpop.xlane.xlu0 %167 }
 0x316   :  { %v170_v43 = vsub.f32 %v160_v17, %v168_v42  ;;  %v372_v54 = vmul.f32 1.442695, %v370_v52 }
 0x318   :  { %v1942_v44 = vpop.eup %1657  ;;  %v173_v45 = vmul.f32 1.442695, %v170_v43 }
 0x319   :  { %v175_v46 = vsel %vm162_vm9, %v1942_v44, 0.0 }
 0x31a   :  { %1659 = vpow2.f32 %v173_v45  ;;  %176 = vadd.xlane.f32.xlu2 %v175_v46 }
 0x31b   :  { %v302_v47 = vpop.xlane.xlu2 %301  ;;  %v369_v55 = vpop.xlane.xlu1 %368 }
 0x31c   :  { %v304_v48 = vsub.f32 %v295_v21, %v302_v47  ;;  %v371_v57 = vsub.f32 %v362_v24, %v369_v55 }
 0x31d   :  { %v299_v3 = vpop.xlane.xlu0 %298 }
 0x31e   :  { %v307_v49 = vmul.f32 1.442695, %v304_v48  ;;  %v374_v59 = vmul.f32 1.442695, %v371_v57  ;;  %v303_v4 = vsub.f32 %v1930_v23, %v299_v3 }
 0x320   :  { %v1660_v50 = vpop.eup %1659  ;;  %1661 = vpow2.f32 %v307_v49  ;;  %v305_v6 = vmul.f32 1.442695, %v303_v4 }
 0x321   :  { %v178_v53 = vsel %vm162_vm9, %v1660_v50, 0.0  ;;  %1663 = vpow2.f32 %v372_v54  ;;  %v1563_v54 = vld [vmem:[%s2241_s4] sm:$0xff] }
 0x322   :  { %179 = vadd.xlane.f32.xlu1 %v178_v53  ;;  %1665 = vpow2.f32 %v374_v59  ;;  %v1564_v53 = vld [vmem:[%s2241_s4 + $0x8] sm:$0xff] }
 0x323   :  { %1667 = vpow2.f32 %v305_v6  ;;  %464 = vmatpush.bf16.msra.mxu0 %v1564_v53 }
 0x325   :  { %253 = vrot.lane.b32.xlu0 %v1883_v51, %s1775_s1 }
 0x326   :  { %v1949_v56 = vpop.eup %1661 }
 0x327   :  { %v312_v58 = vsel %vm162_vm9, %v1949_v56, 0.0  ;;  %v1664_v60 = vpop.eup %1663  ;;  %465 = vmatpush.bf16.msra.mxu0 %v1563_v54  ;;  %v1574_v54 = vld [vmem:[%s2245_s8 + $0x38] sm:$0xff] }
 0x328   :  { %v376_v61 = vsel %vm162_vm9, %v1664_v60, 0.0  ;;  %v1666_v62 = vpop.eup %1665  ;;  %645 = vmatpush.bf16.msra.mxu3 %v1574_v54 }
 0x329   :  { %v379_v1 = vsel %vm162_vm9, %v1666_v62, 0.0  ;;  %v1668_v7 = vpop.eup %1667 }
 0x32a   :  { %313 = vadd.xlane.f32.xlu1 %v312_v58  ;;  %v309_v8 = vsel %vm162_vm9, %v1668_v7, 0.0 }
 0x332   :  { %377 = vadd.xlane.f32.xlu1 %v376_v61  ;;  %186 = vrot.lane.b32.xlu2 %v1883_v51, %s1776_s23 }
 0x33a   :  { %387 = vrot.lane.b32.xlu2 %v1883_v51, %s2254_s24  ;;  %380 = vadd.xlane.f32.xlu1 %v379_v1  ;;  %s1783_s24 = smov 128  }
 0x34f   :  { %310 = vadd.xlane.f32.xlu0 %v309_v8 }
 0x353   :  { %320 = vrot.lane.b32.xlu1 %v1883_v51, %s1778_s0 }
 0x37c   :  { %v244_v11 = vpop.xlane.xlu1 %243 }
 0x384   :  { %v247_v9 = vpop.xlane.xlu0 %246 }
 0x385   :  { %1669 = vrcp.f32 %v247_v9 }
 0x386   :  { %1671 = vrcp.f32 %v244_v11 }
 0x38b   :  { %v1670_v13 = vpop.eup %1669 }
 0x38c   :  { %v1672_v14 = vpop.eup %1671  ;;  %v251_v17 = vmul.f32 %v1670_v13, %v1656_v38 }
 0x38d   :  { %v177_v12 = vpop.xlane.xlu2 %176  ;;  %v250_v19 = vmul.f32 %v1672_v14, %v1937_v33 }
 0x38e   :  { %1673 = vrcp.f32 %v177_v12  ;;  %v1639_v12 = vld [vmem:[%s2242_s5] ss:$0 sm:$0xff] }
 0x38f   :  { %v252_v20 = vpack.c.bf16 %v251_v17, %v250_v19 }
 0x394   :  { %v1674_v21 = vpop.eup %1673 }
 0x395   :  { %v187_v15 = vpop.permute.xlu2 %186  ;;  %v180_v16 = vpop.xlane.xlu1 %179  ;;  %v183_v22 = vmul.f32 %v1674_v21, %v1942_v44 }
 0x396   :  { %1675 = vrcp.f32 %v180_v16  ;;  %199 = vmatpush.bf16.msrb.mxu1 %v187_v15 }
 0x397   :  { %v254_v18 = vpop.permute.xlu0 %253 }
 0x398   :  { %266 = vmatpush.bf16.msra.mxu2 %v254_v18 }
 0x39b   :  { %1398 = vmatmul.msk.bf16.vlgmr.msra.gmra.mxu2 %vm162_vm9, %v252_v20 }
 0x39c   :  { %v1676_v51 = vpop.eup %1675 }
 0x39d   :  { %v184_v23 = vmul.f32 %v1676_v51, %v1660_v50  ;;  %v388_v24 = vpop.permute.xlu2 %387  ;;  %v314_v25 = vpop.xlane.xlu1 %313 }
 0x39e   :  { %400 = vmatpush.bf16.msrb.mxu2 %v388_v24 }
 0x39f   :  { %v185_v26 = vpack.c.bf16 %v184_v23, %v183_v22 }
 0x3a1   :  { %1396 = vmatmul.msk.bf16.vlgmr.msrb.gmra.mxu1 %vm162_vm9, %v185_v26 }
 0x3a5   :  { %v378_v27 = vpop.xlane.xlu1 %377 }
 0x3a6   :  { %1677 = vrcp.f32 %v378_v27 }
 0x3ac   :  { %v1678_v29 = vpop.eup %1677 }
 0x3ad   :  { %v381_v28 = vpop.xlane.xlu1 %380  ;;  %v384_v31 = vmul.f32 %v1678_v29, %v1664_v60  ;;  %v1565_v29 = vld [vmem:[%s2243_s6] sm:$0xff] }
 0x3ae   :  { %1679 = vrcp.f32 %v381_v28  ;;  %v1566_v28 = vld [vmem:[%s2243_s6 + $0x8] sm:$0xff] }
 0x3af   :  { %1681 = vrcp.f32 %v314_v25 }
 0x3b4   :  { %v1680_v30 = vpop.eup %1679 }
 0x3b5   :  { %v385_v32 = vmul.f32 %v1680_v30, %v1666_v62  ;;  %v1682_v36 = vpop.eup %1681 }
 0x3b6   :  { %v318_v38 = vmul.f32 %v1682_v36, %v1949_v56 }
 0x3b7   :  { %v386_v33 = vpack.c.bf16 %v385_v32, %v384_v31 }
 0x3b9   :  { %1402 = vmatmul.msk.bf16.vlgmr.msrb.gmra.mxu2 %vm162_vm9, %v386_v33 }
 0x3c2   :  { %v311_v34 = vpop.xlane.xlu0 %310 }
 0x3c3   :  { %1683 = vrcp.f32 %v311_v34 }
 0x3c5   :  { %v321_v35 = vpop.permute.xlu1 %320 }
 0x3c6   :  { %333 = vmatpush.bf16.msra.mxu1 %v321_v35 }
 0x3c9   :  { %v1684_v37 = vpop.eup %1683 }
 0x3ca   :  { %v317_v39 = vmul.f32 %v1684_v37, %v1668_v7  ;;  %554 = vmatpush.bf16.msrb.mxu1 %v1566_v28 }
 0x3cc   :  { %v319_v40 = vpack.c.bf16 %v318_v38, %v317_v39 }
 0x3ce   :  { %1400 = vmatmul.msk.bf16.vlgmr.msra.gmra.mxu1 %vm162_vm9, %v319_v40 }
 0x3cf   :  { %555 = vmatpush.bf16.msrb.mxu1 %v1565_v29 }
 0x41e   :  { %v268_v41 = vpop.f32.mrf.mxu2  ;;  %v201_v44 = vpop.f32.mrf.mxu1 }
 0x426   :  { %v270_v42 = vpop.f32.mrf.mxu2  ;;  %v203_v45 = vpop.f32.mrf.mxu1 }
 0x427   :  { %v1608_v43 = vpack.i.bf16 %v270_v42, %v268_v41 }
 0x429   :  { %1609 = vrot.lane.b32.xlu2 %v1608_v43, %s2252_s25 }
 0x43c   :  { %v402_v47 = vpop.f32.mrf.mxu2 }
 0x444   :  { %v404_v50 = vpop.f32.mrf.mxu2 }
 0x445   :  { %v1618_v52 = vpack.i.bf16 %v404_v50, %v402_v47 }
 0x44b   :  { %v335_v46 = vpop.f32.mrf.mxu1 }
 0x453   :  { %v337_v48 = vpop.f32.mrf.mxu1 }
 0x454   :  { %v1613_v49 = vpack.i.bf16 %v337_v48, %v335_v46 }
 0x456   :  { %1614 = vrot.lane.b32.xlu2 %v1613_v49, %s2250_s26 }
 0x45e   :  { %1619 = vrot.lane.b32.xlu2 %v1618_v52, %s2251_s27  ;;  %s1374_s27 = sshll.u32 %s2249_s12, 4  ;;  %s1375_s27 = int_to_ptr.hbm [resolvable:$true] %s1374_s27 }
 0x483   :  { %v1610_v55 = vpop.permute.xlu2 %1609 }
 0x484   :  { %v1612_v57 = vunpack.i.h.bf16 %v1610_v55  ;;  %v1611_v58 = vunpack.i.l.bf16 %v1610_v55  ;;  %v1573_v55 = vld [vmem:[%s2245_s8 + $0x30] sm:$0xff] }
 0x485   :  { %646 = vmatpush.bf16.msra.mxu3 %v1573_v55 }
 0x486   :  { %v431_v62 = vsel %vm141_vm8, %v201_v44, %v1611_v58  ;;  %v432_v1 = vsel %vm141_vm8, %v203_v45, %v1612_v57  ;;  %v1571_v57 = vld [vmem:[%s2245_s8 + $0x20] sm:$0xff]  ;;  %v1570_v58 = vld [vmem:[%s2245_s8 + $0x18] sm:$0xff] }
 0x4b0   :  { %v1615_v56 = vpop.permute.xlu2 %1614 }
 0x4b1   :  { %v1617_v59 = vunpack.i.h.bf16 %v1615_v56  ;;  %v1616_v60 = vunpack.i.l.bf16 %v1615_v56  ;;  %v1572_v56 = vld [vmem:[%s2245_s8 + $0x28] sm:$0xff] }
 0x4b2   :  { %647 = vmatpush.bf16.msra.mxu3 %v1572_v56 }
 0x4b3   :  { %v434_v6 = vsel %vm162_vm9, %v432_v1, %v1617_v59  ;;  %v433_v7 = vsel %vm162_vm9, %v431_v62, %v1616_v60  ;;  %v1569_v59 = vld [vmem:[%s2245_s8 + $0x10] sm:$0xff]  ;;  %v1568_v60 = vld [vmem:[%s2245_s8 + $0x8] sm:$0xff]  ;;  %v1640_v62 = vld [vmem:[%s2244_s7] ss:$0 sm:$0xff] }
 0x4b6   :  { %648 = vmatpush.bf16.msra.mxu3 %v1571_v57 }
 0x4b8   :  { %v1620_v61 = vpop.permute.xlu2 %1619 }
 0x4b9   :  { %v1622_v3 = vunpack.i.h.bf16 %v1620_v61  ;;  %v1621_v4 = vunpack.i.l.bf16 %v1620_v61  ;;  %v1567_v61 = vld [vmem:[%s2245_s8] sm:$0xff] }
 0x4ba   :  { %649 = vmatpush.bf16.msra.mxu3 %v1570_v58 }
 0x4bb   :  { %v436_v8 = vsel %vm435_vm10, %v433_v7, %v1621_v4  ;;  %v437_v9 = vsel %vm435_vm10, %v434_v6, %v1622_v3 }
 0x4bc   :  { %v438_v11 = vpack.c.bf16 %v437_v9, %v436_v8 }
 0x4be   :  { %1411 = vmatmul.msk.bf16.vlgmr.msra.gmra.mxu0 %vm47_vm0, %v438_v11  ;;  %650 = vmatpush.bf16.msra.mxu3 %v1569_v59 }
 0x4c2   :  { %651 = vmatpush.bf16.msra.mxu3 %v1568_v60 }
 0x4c6   :  { %652 = vmatpush.bf16.msra.mxu3 %v1567_v61 }
 0x53b   :  { %v467_v13 = vpop.f32.mrf.mxu0 }
 0x53c   :  { %v472_v14 = vadd.f32 %v467_v13, %v1852_v0 }
 0x53e   :  { %v1990_v15 = vadd.f32 %v1639_v12, %v472_v14 }
 0x540   :  { %v480_v16 = vsel %vm47_vm0, %v1990_v15, 0.0 }
 0x541   :  { %481 = vadd.xlane.f32.xlu1 %v480_v16 }
 0x543   :  { %v469_v17 = vpop.f32.mrf.mxu0 }
 0x544   :  { %v473_v18 = vadd.f32 %v469_v17, %v1859_v2 }
 0x546   :  { %v1995_v19 = vadd.f32 %v1639_v12, %v473_v18 }
 0x548   :  { %v483_v20 = vsel %vm47_vm0, %v1995_v19, 0.0 }
 0x549   :  { %484 = vadd.xlane.f32.xlu2 %v483_v20 }
 0x5b4   :  { %v482_v21 = vpop.xlane.xlu1 %481 }
 0x5b5   :  { %v486_v51 = vmul.f32 %v482_v21, %v1863_v10 }
 0x5b7   :  { %v488_v0 = vsub.f32 %v1990_v15, %v486_v51 }
 0x5b9   :  { %v490_v22 = vmul.f32 %v488_v0, %v488_v0 }
 0x5bb   :  { %v492_v23 = vsel %vm47_vm0, %v490_v22, 0.0 }
 0x5bc   :  { %493 = vadd.xlane.f32.xlu0 %v492_v23  ;;  %v485_v24 = vpop.xlane.xlu2 %484 }
 0x5bd   :  { %v487_v25 = vmul.f32 %v485_v24, %v1863_v10 }
 0x5bf   :  { %v489_v2 = vsub.f32 %v1995_v19, %v487_v25 }
 0x5c1   :  { %v491_v26 = vmul.f32 %v489_v2, %v489_v2 }
 0x5c3   :  { %v495_v27 = vsel %vm47_vm0, %v491_v26, 0.0  ;;  %v1641_v26 = vld [vmem:[%s2246_s9] ss:$0 sm:$0xff] }
 0x5c4   :  { %496 = vadd.xlane.f32.xlu0 %v495_v27 }
 0x62f   :  { %v494_v30 = vpop.xlane.xlu0 %493 }
 0x630   :  { %v498_v31 = vmul.f32 %v494_v30, %v1863_v10 }
 0x632   :  { %v500_v32 = vadd.f32 1e-05, %v498_v31 }
 0x634   :  { %1685 = vrsqrt.f32 %v500_v32  ;;  %vm508_vm12 = vweird.f32 %v500_v32 }
 0x637   :  { %v497_v33 = vpop.xlane.xlu0 %496 }
 0x638   :  { %v499_v34 = vmul.f32 %v497_v33, %v1863_v10 }
 0x63a   :  { %v1686_v35 = vpop.eup %1685  ;;  %v501_v36 = vadd.f32 1e-05, %v499_v34 }
 0x63b   :  { %v503_v37 = vmul.f32 %v1686_v35, %v500_v32  ;;  %vm509_vm11 = vweird.f32 %v1686_v35 }
 0x63c   :  { %1687 = vrsqrt.f32 %v501_v36  ;;  %vm510_vm14 = vmor %vm508_vm12, %vm509_vm11  ;;  %vm518_vm15 = vweird.f32 %v501_v36 }
 0x63d   :  { %v504_v38 = vmul.f32 %v1686_v35, %v503_v37 }
 0x63f   :  { %v505_v39 = vmul.f32 0.5, %v504_v38 }
 0x641   :  { %v506_v41 = vsub.f32 1.5, %v505_v39 }
 0x642   :  { %v1688_v40 = vpop.eup %1687 }
 0x643   :  { %v513_v42 = vmul.f32 %v1688_v40, %v501_v36  ;;  %v507_v44 = vmul.f32 %v1686_v35, %v506_v41  ;;  %vm519_vm13 = vweird.f32 %v1688_v40 }
 0x644   :  { %vm520_vm1 = vmor %vm518_vm15, %vm519_vm13 }
 0x645   :  { %v514_v43 = vmul.f32 %v1688_v40, %v513_v42  ;;  %v511_v47 = vsel %vm510_vm14, %v1686_v35, %v507_v44  ;;  %v1575_v44 = vld [vmem:[%s2239_s2 + $0x10] sm:$0xff] }
 0x646   :  { %v522_v50 = vmul.f32 %v511_v47, %v488_v0 }
 0x647   :  { %v515_v45 = vmul.f32 0.5, %v514_v43  ;;  %v1576_v43 = vld [vmem:[%s2239_s2 + $0x18] sm:$0xff] }
 0x648   :  { %743 = vmatpush.bf16.msra.mxu2 %v1576_v43 }
 0x649   :  { %v516_v46 = vsub.f32 1.5, %v515_v45 }
 0x64b   :  { %v517_v48 = vmul.f32 %v1688_v40, %v516_v46 }
 0x64c   :  { %744 = vmatpush.bf16.msra.mxu2 %v1575_v44 }
 0x64d   :  { %v521_v49 = vsel %vm520_vm1, %v1688_v40, %v517_v48 }
 0x64e   :  { %v523_v52 = vmul.f32 %v521_v49, %v489_v2 }
 0x650   :  { %v524_v53 = vpack.c.bf16 %v523_v52, %v522_v50 }
 0x652   :  { %1420 = vmatmul.msk.bf16.vlgmr.msrb.gmra.mxu1 %vm47_vm0, %v524_v53 }
 0x6cf   :  { %v557_v1 = vpop.f32.mrf.mxu1 }
 0x6d0   :  { %v558_v3 = vadd.f32 %v1640_v62, %v557_v1 }
 0x6d2   :  { %v564_v4 = vmul.f32 0.044715, %v558_v3  ;;  %v562_v0 = vmul.f32 0.5, %v558_v3 }
 0x6d4   :  { %v566_v6 = vmul.f32 %v564_v4, %v558_v3 }
 0x6d6   :  { %v568_v7 = vmul.f32 %v566_v6, %v558_v3 }
 0x6d7   :  { %v559_v8 = vpop.f32.mrf.mxu1 }
 0x6d8   :  { %v570_v9 = vadd.f32 %v568_v7, %v558_v3  ;;  %v560_v11 = vadd.f32 %v1640_v62, %v559_v8 }
 0x6da   :  { %v565_v12 = vmul.f32 0.044715, %v560_v11  ;;  %v572_v13 = vmul.f32 0.7978846, %v570_v9  ;;  %v563_v22 = vmul.f32 0.5, %v560_v11 }
 0x6dc   :  { %v567_v14 = vmul.f32 %v565_v12, %v560_v11  ;;  %1689 = vtanh.f32 %v572_v13 }
 0x6de   :  { %v569_v16 = vmul.f32 %v567_v14, %v560_v11 }
 0x6e0   :  { %v571_v17 = vadd.f32 %v569_v16, %v560_v11  ;;  %v1642_v11 = vld [vmem:[%s2240_s3 + $0x1] ss:$0 sm:$0xff]  ;;  %s2255_s3 = smov 40  }
 0x6e2   :  { %v573_v18 = vmul.f32 0.7978846, %v571_v17  ;;  %v1690_v20 = vpop.eup %1689 }
 0x6e3   :  { %v576_v21 = vadd.f32 1.0, %v1690_v20 }
 0x6e4   :  { %1691 = vtanh.f32 %v573_v18 }
 0x6e5   :  { %v578_v24 = vmul.f32 %v576_v21, %v562_v0 }
 0x6ea   :  { %v1692_v51 = vpop.eup %1691 }
 0x6eb   :  { %v577_v23 = vadd.f32 1.0, %v1692_v51 }
 0x6ed   :  { %v579_v25 = vmul.f32 %v577_v23, %v563_v22 }
 0x6ef   :  { %v580_v2 = vpack.c.bf16 %v579_v25, %v578_v24 }
 0x6f1   :  { %653 = vmatmul.bf16.vlgmr.msra.gmra.mxu3 %v580_v2 }
 0x774   :  { %v654_v27 = vpop.f32.mrf.mxu3 }
 0x775   :  { %v659_v28 = vadd.f32 %v654_v27, %v1990_v15 }
 0x777   :  { %v2045_v29 = vadd.f32 %v1641_v26, %v659_v28 }
 0x779   :  { %v667_v30 = vsel %vm47_vm0, %v2045_v29, 0.0 }
 0x77a   :  { %668 = vadd.xlane.f32.xlu0 %v667_v30 }
 0x77c   :  { %v656_v31 = vpop.f32.mrf.mxu3 }
 0x77d   :  { %v660_v32 = vadd.f32 %v656_v31, %v1995_v19 }
 0x77f   :  { %v2050_v33 = vadd.f32 %v1641_v26, %v660_v32 }
 0x781   :  { %v670_v34 = vsel %vm47_vm0, %v2050_v33, 0.0 }
 0x782   :  { %671 = vadd.xlane.f32.xlu0 %v670_v34 }
 0x7ed   :  { %v669_v35 = vpop.xlane.xlu0 %668 }
 0x7ee   :  { %v673_v36 = vmul.f32 %v669_v35, %v1863_v10 }
 0x7f0   :  { %v675_v15 = vsub.f32 %v2045_v29, %v673_v36 }
 0x7f2   :  { %v677_v37 = vmul.f32 %v675_v15, %v675_v15 }
 0x7f4   :  { %v679_v38 = vsel %vm47_vm0, %v677_v37, 0.0 }
 0x7f5   :  { %680 = vadd.xlane.f32.xlu0 %v679_v38  ;;  %v672_v39 = vpop.xlane.xlu0 %671 }
 0x7f6   :  { %v674_v40 = vmul.f32 %v672_v39, %v1863_v10 }
 0x7f8   :  { %v676_v19 = vsub.f32 %v2050_v33, %v674_v40 }
 0x7fa   :  { %v678_v41 = vmul.f32 %v676_v19, %v676_v19 }
 0x7fc   :  { %v682_v42 = vsel %vm47_vm0, %v678_v41, 0.0 }
 0x7fd   :  { %683 = vadd.xlane.f32.xlu1 %v682_v42 }
 0x868   :  { %v681_v45 = vpop.xlane.xlu0 %680 }
 0x869   :  { %v685_v46 = vmul.f32 %v681_v45, %v1863_v10 }
 0x86b   :  { %v687_v47 = vadd.f32 1e-05, %v685_v46 }
 0x86d   :  { %1693 = vrsqrt.f32 %v687_v47  ;;  %vm695_vm3 = vweird.f32 %v687_v47 }
 0x870   :  { %v684_v48 = vpop.xlane.xlu1 %683 }
 0x871   :  { %v686_v49 = vmul.f32 %v684_v48, %v1863_v10 }
 0x873   :  { %v1694_v50 = vpop.eup %1693  ;;  %v688_v52 = vadd.f32 1e-05, %v686_v49 }
 0x874   :  { %v690_v53 = vmul.f32 %v1694_v50, %v687_v47  ;;  %vm696_vm2 = vweird.f32 %v1694_v50 }
 0x875   :  { %1695 = vrsqrt.f32 %v688_v52  ;;  %vm697_vm5 = vmor %vm695_vm3, %vm696_vm2  ;;  %vm705_vm6 = vweird.f32 %v688_v52 }
 0x876   :  { %v691_v54 = vmul.f32 %v1694_v50, %v690_v53 }
 0x878   :  { %v692_v55 = vmul.f32 0.5, %v691_v54 }
 0x87a   :  { %v693_v57 = vsub.f32 1.5, %v692_v55 }
 0x87b   :  { %v1696_v56 = vpop.eup %1695 }
 0x87c   :  { %v700_v58 = vmul.f32 %v1696_v56, %v688_v52  ;;  %v694_v60 = vmul.f32 %v1694_v50, %v693_v57  ;;  %vm706_vm4 = vweird.f32 %v1696_v56 }
 0x87d   :  { %vm707_vm7 = vmor %vm705_vm6, %vm706_vm4 }
 0x87e   :  { %v701_v59 = vmul.f32 %v1696_v56, %v700_v58  ;;  %v698_v1 = vsel %vm697_vm5, %v1694_v50, %v694_v60 }
 0x87f   :  { %v709_v6 = vmul.f32 %v698_v1, %v675_v15 }
 0x880   :  { %v702_v61 = vmul.f32 0.5, %v701_v59 }
 0x882   :  { %v703_v62 = vsub.f32 1.5, %v702_v61 }
 0x884   :  { %v704_v3 = vmul.f32 %v1696_v56, %v703_v62 }
 0x886   :  { %v708_v4 = vsel %vm707_vm7, %v1696_v56, %v704_v3 }
 0x887   :  { %v710_v7 = vmul.f32 %v708_v4, %v676_v19 }
 0x889   :  { %v711_v8 = vpack.c.bf16 %v710_v7, %v709_v6 }
 0x88b   :  { %1466 = vmatmul.msk.bf16.vlgmr.msra.gmra.mxu2 %vm47_vm0, %v711_v8 }
 0x90e   :  { %v746_v9 = vpop.f32.mrf.mxu2 }
 0x90f   :  { %v747_v13 = vadd.f32 %v1642_v11, %v746_v9 }
 0x916   :  { %v748_v12 = vpop.f32.mrf.mxu2 }
 0x917   :  { %v749_v14 = vadd.f32 %v1642_v11, %v748_v12 }
 0x919   :  { %v2072_v16 = vpack.c.bf16 %v749_v14, %v747_v13 }
 0x91b   :  { %753 = vrot.lane.b32.xlu2 %v2072_v16, %s1769_s13  ;;  %s2257_s13 = smov 24  }
 0x923   :  { %818 = vrot.lane.b32.xlu2 %v2072_v16, %s1771_s15 }
 0x92b   :  { %887 = vrot.lane.b32.xlu2 %v2072_v16, %s1773_s17 }
 0x933   :  { %885 = vrot.lane.b32.xlu2 %v2072_v16, %s1774_s18 }
 0x975   :  { %v754_v17 = vpop.permute.xlu2 %753 }
 0x976   :  { %v759_v18 = vsel %vm141_vm8, %v754_v17, 0 }
 0x977   :  { %768 = vmatpush.bf16.xpose.msrb.mxu0 %v759_v18 }
 0x97d   :  { %v819_v35 = vpop.permute.xlu2 %818 }
 0x97e   :  { %1467 = vmatmul.msk.bf16.vlgmr.msrb.gmra.mxu0 %vm141_vm8, %v2072_v16 }
 0x985   :  { %v888_v37 = vpop.permute.xlu2 %887 }
 0x986   :  { %v893_v39 = vsel %vm141_vm8, %v888_v37, 0 }
 0x98d   :  { %v886_v53 = vpop.permute.xlu2 %885 }
 0x9fb   :  { %v770_v20 = vpop.f32.mrf.mxu0 }
 0x9fc   :  { %v771_v21 = vadd.f32 %v770_v20, %v1911_v63 }
 0x9fe   :  { %v775_v51 = vsel %vm162_vm9, %v771_v21, -inf }
 0x9ff   :  { %776 = vmax.xlane.f32.xlu0 %v775_v51 }
 0xa03   :  { %v772_v0 = vpop.f32.mrf.mxu0 }
 0xa04   :  { %v773_v22 = vadd.f32 %v772_v0, %v1918_v5 }
 0xa06   :  { %v778_v23 = vsel %vm162_vm9, %v773_v22, -inf }
 0xa07   :  { %779 = vmax.xlane.f32.xlu1 %v778_v23 }
 0xa13   :  { %820 = vrot.lane.b32.xlu0 %v2072_v16, %s1770_s14  ;;  %s2258_s14 = smov 16  }
 0xa20   :  { %798 = vrot.lane.b32.xlu1 %v2072_v16, %s1776_s23 }
 0xa72   :  { %v777_v24 = vpop.xlane.xlu0 %776 }
 0xa73   :  { %v781_v25 = vsub.f32 %v771_v21, %v777_v24 }
 0xa75   :  { %v783_v2 = vmul.f32 1.442695, %v781_v25 }
 0xa77   :  { %1697 = vpow2.f32 %v783_v2 }
 0xa7a   :  { %v780_v26 = vpop.xlane.xlu1 %779 }
 0xa7b   :  { %v782_v27 = vsub.f32 %v773_v22, %v780_v26 }
 0xa7d   :  { %v1698_v28 = vpop.eup %1697  ;;  %v785_v30 = vmul.f32 1.442695, %v782_v27 }
 0xa7e   :  { %v787_v31 = vsel %vm162_vm9, %v1698_v28, 0.0 }
 0xa7f   :  { %1699 = vpow2.f32 %v785_v30  ;;  %788 = vadd.xlane.f32.xlu0 %v787_v31 }
 0xa85   :  { %v1700_v32 = vpop.eup %1699  ;;  %v821_v34 = vpop.permute.xlu0 %820 }
 0xa86   :  { %v826_v36 = vsel %vm141_vm8, %v821_v34, 0  ;;  %v790_v15 = vsel %vm162_vm9, %v1700_v32, 0.0 }
 0xa87   :  { %791 = vadd.xlane.f32.xlu1 %v790_v15  ;;  %835 = vmatpush.bf16.xpose.msrb.mxu2 %v826_v36 }
 0xa8e   :  { %1469 = vmatmul.msk.bf16.vlgmr.msrb.gmra.mxu2 %vm141_vm8, %v819_v35 }
 0xa92   :  { %v799_v38 = vpop.permute.xlu1 %798 }
 0xa93   :  { %811 = vmatpush.bf16.msra.mxu1 %v799_v38  ;;  %954 = vrot.lane.b32.xlu0 %v2072_v16, %s1768_s30  ;;  %s2256_s30 = smov 8  }
 0xa97   :  { %902 = vmatpush.bf16.xpose.msrb.mxu1 %v893_v39 }
 0xaa0   :  { %952 = vrot.lane.b32.xlu1 %v2072_v16, %s1772_s16 }
 0xaf2   :  { %v789_v40 = vpop.xlane.xlu0 %788 }
 0xaf3   :  { %1701 = vrcp.f32 %v789_v40 }
 0xaf9   :  { %v1702_v41 = vpop.eup %1701 }
 0xafa   :  { %v792_v19 = vpop.xlane.xlu1 %791  ;;  %v795_v43 = vmul.f32 %v1702_v41, %v1698_v28 }
 0xafb   :  { %1703 = vrcp.f32 %v792_v19 }
 0xb01   :  { %v1704_v42 = vpop.eup %1703 }
 0xb02   :  { %v796_v44 = vmul.f32 %v1704_v42, %v1700_v32 }
 0xb04   :  { %v797_v45 = vpack.c.bf16 %v796_v44, %v795_v43 }
 0xb05   :  { %v955_v46 = vpop.permute.xlu0 %954 }
 0xb06   :  { %v960_v47 = vsel %vm141_vm8, %v955_v46, 0  ;;  %1468 = vmatmul.msk.bf16.vlgmr.msra.gmra.mxu1 %vm162_vm9, %v797_v45 }
 0xb07   :  { %969 = vmatpush.bf16.xpose.msra.mxu2 %v960_v47 }
 0xb11   :  { %v837_v48 = vpop.f32.mrf.mxu2 }
 0xb12   :  { %v838_v49 = vadd.f32 %v837_v48, %v1911_v63  ;;  %v953_v50 = vpop.permute.xlu1 %952 }
 0xb13   :  { %1473 = vmatmul.msk.bf16.vlgmr.msra.gmra.mxu2 %vm141_vm8, %v953_v50 }
 0xb14   :  { %v842_v52 = vsel %vm162_vm9, %v838_v49, -inf }
 0xb15   :  { %843 = vmax.xlane.f32.xlu0 %v842_v52 }
 0xb16   :  { %1471 = vmatmul.msk.bf16.vlgmr.msrb.gmra.mxu1 %vm141_vm8, %v886_v53 }
 0xb19   :  { %v839_v54 = vpop.f32.mrf.mxu2 }
 0xb1a   :  { %v840_v55 = vadd.f32 %v839_v54, %v1918_v5 }
 0xb1c   :  { %v845_v56 = vsel %vm162_vm9, %v840_v55, -inf }
 0xb1d   :  { %846 = vmax.xlane.f32.xlu2 %v845_v56 }
 0xb83   :  { %v2110_v57 = vpop.f32.mrf.mxu1 }
 0xb88   :  { %v844_v61 = vpop.xlane.xlu0 %843 }
 0xb89   :  { %v848_v4 = vsub.f32 %v838_v49, %v844_v61 }
 0xb8b   :  { %v2112_v58 = vpop.f32.mrf.mxu1  ;;  %v850_v9 = vmul.f32 1.442695, %v848_v4 }
 0xb90   :  { %v847_v59 = vpop.xlane.xlu2 %846 }
 0xb91   :  { %v849_v60 = vsub.f32 %v840_v55, %v847_v59 }
 0xb93   :  { %v904_v62 = vpop.f32.mrf.mxu1  ;;  %v852_v1 = vmul.f32 1.442695, %v849_v60 }
 0xb94   :  { %v905_v3 = vadd.f32 %v904_v62, %v1911_v63 }
 0xb95   :  { %1705 = vpow2.f32 %v852_v1 }
 0xb96   :  { %v971_v6 = vpop.f32.mrf.mxu2  ;;  %v909_v7 = vsel %vm162_vm9, %v905_v3, -inf  ;;  %1707 = vpow2.f32 %v850_v9 }
 0xb97   :  { %v972_v8 = vadd.f32 %v971_v6, %v1911_v63  ;;  %910 = vmax.xlane.f32.xlu1 %v909_v7 }
 0xb99   :  { %v976_v11 = vsel %vm162_vm9, %v972_v8, -inf }
 0xb9a   :  { %977 = vmax.xlane.f32.xlu2 %v976_v11 }
 0xb9b   :  { %v906_v12 = vpop.f32.mrf.mxu1  ;;  %v1706_v14 = vpop.eup %1705 }
 0xb9c   :  { %v907_v13 = vadd.f32 %v906_v12, %v1918_v5  ;;  %v857_v63 = vsel %vm162_vm9, %v1706_v14, 0.0  ;;  %v1708_v51 = vpop.eup %1707 }
 0xb9d   :  { %v854_v0 = vsel %vm162_vm9, %v1708_v51, 0.0 }
 0xb9e   :  { %v973_v17 = vpop.f32.mrf.mxu2  ;;  %v912_v18 = vsel %vm162_vm9, %v907_v13, -inf }
 0xb9f   :  { %v974_v20 = vadd.f32 %v973_v17, %v1918_v5  ;;  %913 = vmax.xlane.f32.xlu0 %v912_v18  ;;  %v1578_v18 = vld [vmem:[%s2241_s4 + $0x18] sm:$0xff] }
 0xba0   :  { %1076 = vmatpush.bf16.msra.mxu1 %v1578_v18  ;;  %v1587_v18 = vld [vmem:[%s2245_s8 + $0x70] sm:$0xff] }
 0xba1   :  { %v979_v21 = vsel %vm162_vm9, %v974_v20, -inf }
 0xba2   :  { %980 = vmax.xlane.f32.xlu1 %v979_v21  ;;  %858 = vadd.xlane.f32.xlu2 %v857_v63 }
 0xba7   :  { %855 = vadd.xlane.f32.xlu0 %v854_v0 }
 0xbbb   :  { %865 = vrot.lane.b32.xlu1 %v2072_v16, %s1775_s1 }
 0xc0a   :  { %v911_v22 = vpop.xlane.xlu1 %910 }
 0xc0b   :  { %v915_v25 = vsub.f32 %v905_v3, %v911_v22 }
 0xc0d   :  { %v978_v23 = vpop.xlane.xlu2 %977  ;;  %v917_v5 = vmul.f32 1.442695, %v915_v25 }
 0xc0e   :  { %v982_v24 = vsub.f32 %v972_v8, %v978_v23 }
 0xc10   :  { %v984_v2 = vmul.f32 1.442695, %v982_v24 }
 0xc12   :  { %1709 = vpow2.f32 %v984_v2  ;;  %v914_v26 = vpop.xlane.xlu0 %913 }
 0xc13   :  { %1711 = vpow2.f32 %v917_v5  ;;  %v916_v31 = vsub.f32 %v907_v13, %v914_v26 }
 0xc15   :  { %v981_v27 = vpop.xlane.xlu1 %980  ;;  %v919_v35 = vmul.f32 1.442695, %v916_v31  ;;  %v859_v38 = vpop.xlane.xlu2 %858 }
 0xc16   :  { %v983_v28 = vsub.f32 %v974_v20, %v981_v27  ;;  %v1577_v20 = vld [vmem:[%s2241_s4 + $0x10] sm:$0xff] }
 0xc17   :  { %1077 = vmatpush.bf16.msra.mxu1 %v1577_v20  ;;  %v1586_v20 = vld [vmem:[%s2245_s8 + $0x68] sm:$0xff] }
 0xc18   :  { %v1710_v30 = vpop.eup %1709  ;;  %v986_v32 = vmul.f32 1.442695, %v983_v28 }
 0xc19   :  { %v988_v34 = vsel %vm162_vm9, %v1710_v30, 0.0  ;;  %v1712_v36 = vpop.eup %1711 }
 0xc1a   :  { %1713 = vpow2.f32 %v986_v32  ;;  %989 = vadd.xlane.f32.xlu0 %v988_v34  ;;  %v856_v15 = vpop.xlane.xlu0 %855  ;;  %v921_v40 = vsel %vm162_vm9, %v1712_v36, 0.0 }
 0xc1b   :  { %1715 = vpow2.f32 %v919_v35 }
 0xc1c   :  { %1717 = vrcp.f32 %v856_v15 }
 0xc1d   :  { %1719 = vrcp.f32 %v859_v38 }
 0xc20   :  { %v1714_v37 = vpop.eup %1713 }
 0xc21   :  { %v991_v39 = vsel %vm162_vm9, %v1714_v37, 0.0  ;;  %v1716_v19 = vpop.eup %1715 }
 0xc22   :  { %992 = vadd.xlane.f32.xlu2 %v991_v39  ;;  %922 = vadd.xlane.f32.xlu0 %v921_v40  ;;  %v1718_v41 = vpop.eup %1717  ;;  %v924_v42 = vsel %vm162_vm9, %v1716_v19, 0.0 }
 0xc23   :  { %v1720_v43 = vpop.eup %1719  ;;  %v862_v44 = vmul.f32 %v1718_v41, %v1708_v51 }
 0xc24   :  { %v863_v45 = vmul.f32 %v1720_v43, %v1706_v14 }
 0xc26   :  { %v864_v47 = vpack.c.bf16 %v863_v45, %v862_v44 }
 0xc2a   :  { %925 = vadd.xlane.f32.xlu2 %v924_v42 }
 0xc2d   :  { %v866_v46 = vpop.permute.xlu1 %865 }
 0xc2e   :  { %878 = vmatpush.bf16.msra.mxu0 %v866_v46 }
 0xc31   :  { %1470 = vmatmul.msk.bf16.vlgmr.msra.gmra.mxu0 %vm162_vm9, %v864_v47  ;;  %v1580_v47 = vld [vmem:[%s2243_s6 + $0x18] sm:$0xff] }
 0xc36   :  { %932 = vrot.lane.b32.xlu0 %v2072_v16, %s1778_s0  ;;  %s1782_s0 = smov [#allocation2]  }
 0xc37   :  { %s1372_s20 = sshll.u32 %s1782_s0, 4  ;;  %s1373_s20 = int_to_ptr.vmem [resolvable:$true] %s1372_s20 }
 0xc42   :  { %999 = vrot.lane.b32.xlu2 %v2072_v16, %s2255_s3 }
 0xc8d   :  { %v990_v48 = vpop.xlane.xlu0 %989 }
 0xc95   :  { %v993_v49 = vpop.xlane.xlu2 %992  ;;  %v923_v50 = vpop.xlane.xlu0 %922 }
 0xc96   :  { %1721 = vrcp.f32 %v993_v49 }
 0xc97   :  { %1723 = vrcp.f32 %v990_v48  ;;  %v1579_v48 = vld [vmem:[%s2243_s6 + $0x10] sm:$0xff] }
 0xc9c   :  { %v1722_v53 = vpop.eup %1721 }
 0xc9d   :  { %v926_v52 = vpop.xlane.xlu2 %925  ;;  %v1724_v54 = vpop.eup %1723  ;;  %v997_v55 = vmul.f32 %v1722_v53, %v1714_v37 }
 0xc9e   :  { %1725 = vrcp.f32 %v926_v52  ;;  %v996_v60 = vmul.f32 %v1724_v54, %v1710_v30 }
 0xc9f   :  { %1727 = vrcp.f32 %v923_v50 }
 0xca0   :  { %v998_v1 = vpack.c.bf16 %v997_v55, %v996_v60 }
 0xca4   :  { %v1726_v56 = vpop.eup %1725 }
 0xca5   :  { %v1728_v59 = vpop.eup %1727  ;;  %v1000_v61 = vpop.permute.xlu2 %999  ;;  %v930_v62 = vmul.f32 %v1726_v56, %v1716_v19 }
 0xca6   :  { %1012 = vmatpush.bf16.msrb.mxu0 %v1000_v61  ;;  %v929_v3 = vmul.f32 %v1728_v59, %v1712_v36 }
 0xca8   :  { %v933_v16 = vpop.permute.xlu0 %932  ;;  %v931_v4 = vpack.c.bf16 %v930_v62, %v929_v3 }
 0xca9   :  { %945 = vmatpush.bf16.msrb.mxu3 %v933_v16  ;;  %1474 = vmatmul.msk.bf16.vlgmr.msrb.gmra.mxu0 %vm162_vm9, %v998_v1 }
 0xcac   :  { %1472 = vmatmul.msk.bf16.vlgmr.msrb.gmra.mxu3 %vm162_vm9, %v931_v4 }
 0xcad   :  { %1169 = vmatpush.bf16.msra.mxu3 %v1580_v47 }
 0xcae   :  { %v880_v6 = vpop.f32.mrf.mxu0 }
 0xcb1   :  { %1170 = vmatpush.bf16.msra.mxu3 %v1579_v48 }
 0xcb6   :  { %v882_v7 = vpop.f32.mrf.mxu0 }
 0xcb7   :  { %v1623_v8 = vpack.i.bf16 %v882_v7, %v880_v6 }
 0xcb9   :  { %1624 = vrot.lane.b32.xlu1 %v1623_v8, %s2256_s30 }
 0xd26   :  { %v1014_v9 = vpop.f32.mrf.mxu0 }
 0xd2b   :  { %v1625_v21 = vpop.permute.xlu1 %1624 }
 0xd2c   :  { %v1627_v63 = vunpack.i.h.bf16 %v1625_v21  ;;  %v1626_v51 = vunpack.i.l.bf16 %v1625_v21  ;;  %v1585_v21 = vld [vmem:[%s2245_s8 + $0x60] sm:$0xff] }
 0xd2e   :  { %v1016_v11 = vpop.f32.mrf.mxu0  ;;  %v1044_v25 = vsel %vm141_vm8, %v2112_v58, %v1627_v63  ;;  %v1043_v2 = vsel %vm141_vm8, %v2110_v57, %v1626_v51  ;;  %v1643_v58 = vld [vmem:[%s2242_s5 + $0x1] ss:$0 sm:$0xff]  ;;  %v1584_v63 = vld [vmem:[%s2245_s8 + $0x58] sm:$0xff]  ;;  %v1583_v51 = vld [vmem:[%s2245_s8 + $0x50] sm:$0xff] }
 0xd2f   :  { %v1633_v12 = vpack.i.bf16 %v1016_v11, %v1014_v9  ;;  %v947_v13 = vpop.f32.mrf.mxu3 }
 0xd31   :  { %1634 = vrot.lane.b32.xlu0 %v1633_v12, %s2257_s13 }
 0xd37   :  { %v949_v14 = vpop.f32.mrf.mxu3 }
 0xd38   :  { %v1628_v17 = vpack.i.bf16 %v949_v14, %v947_v13 }
 0xd3a   :  { %1629 = vrot.lane.b32.xlu1 %v1628_v17, %s2258_s14  ;;  %v1588_v17 = vld [vmem:[%s2245_s8 + $0x78] sm:$0xff] }
 0xd3b   :  { %1261 = vmatpush.bf16.msrb.mxu2 %v1588_v17 }
 0xd3f   :  { %1262 = vmatpush.bf16.msrb.mxu2 %v1587_v18 }
 0xd43   :  { %1263 = vmatpush.bf16.msrb.mxu2 %v1586_v20 }
 0xd47   :  { %1264 = vmatpush.bf16.msrb.mxu2 %v1585_v21 }
 0xd4b   :  { %1265 = vmatpush.bf16.msrb.mxu2 %v1584_v63 }
 0xd4f   :  { %1266 = vmatpush.bf16.msrb.mxu2 %v1583_v51 }
 0xda3   :  { %v1635_v0 = vpop.permute.xlu0 %1634 }
 0xda4   :  { %v1637_v5 = vunpack.i.h.bf16 %v1635_v0  ;;  %v1636_v26 = vunpack.i.l.bf16 %v1635_v0  ;;  %v1582_v0 = vld [vmem:[%s2245_s8 + $0x48] sm:$0xff] }
 0xda5   :  { %1267 = vmatpush.bf16.msrb.mxu2 %v1582_v0 }
 0xdac   :  { %v1630_v22 = vpop.permute.xlu1 %1629 }
 0xdad   :  { %v1632_v23 = vunpack.i.h.bf16 %v1630_v22  ;;  %v1631_v24 = vunpack.i.l.bf16 %v1630_v22  ;;  %v1581_v22 = vld [vmem:[%s2245_s8 + $0x40] sm:$0xff] }
 0xdae   :  { %1268 = vmatpush.bf16.msrb.mxu2 %v1581_v22 }
 0xdaf   :  { %v1046_v27 = vsel %vm162_vm9, %v1044_v25, %v1632_v23  ;;  %v1045_v28 = vsel %vm162_vm9, %v1043_v2, %v1631_v24  ;;  %v1644_v23 = vld [vmem:[%s2244_s7 + $0x1] ss:$0 sm:$0xff] }
 0xdb0   :  { %v1047_v30 = vsel %vm435_vm10, %v1045_v28, %v1636_v26  ;;  %v1048_v31 = vsel %vm435_vm10, %v1046_v27, %v1637_v5 }
 0xdb1   :  { %v1049_v32 = vpack.c.bf16 %v1048_v31, %v1047_v30 }
 0xdb3   :  { %1487 = vmatmul.msk.bf16.vlgmr.msra.gmra.mxu1 %vm47_vm0, %v1049_v32 }
 0xe30   :  { %v1079_v34 = vpop.f32.mrf.mxu1 }
 0xe31   :  { %v1084_v57 = vadd.f32 %v1079_v34, %v2045_v29 }
 0xe33   :  { %v2159_v35 = vadd.f32 %v1643_v58, %v1084_v57 }
 0xe35   :  { %v1093_v36 = vsel %vm47_vm0, %v2159_v35, 0.0 }
 0xe36   :  { %1094 = vadd.xlane.f32.xlu1 %v1093_v36 }
 0xe38   :  { %v1081_v15 = vpop.f32.mrf.mxu1 }
 0xe39   :  { %v1085_v37 = vadd.f32 %v1081_v15, %v2050_v33 }
 0xe3b   :  { %v2164_v38 = vadd.f32 %v1643_v58, %v1085_v37 }
 0xe3d   :  { %v1096_v39 = vsel %vm47_vm0, %v2164_v38, 0.0 }
 0xe3e   :  { %1097 = vadd.xlane.f32.xlu2 %v1096_v39 }
 0xea9   :  { %v1095_v40 = vpop.xlane.xlu1 %1094 }
 0xeaa   :  { %v1099_v19 = vmul.f32 %v1095_v40, %v1863_v10 }
 0xeac   :  { %v1101_v29 = vsub.f32 %v2159_v35, %v1099_v19 }
 0xeae   :  { %v1103_v41 = vmul.f32 %v1101_v29, %v1101_v29 }
 0xeb0   :  { %v1105_v42 = vsel %vm47_vm0, %v1103_v41, 0.0 }
 0xeb1   :  { %1106 = vadd.xlane.f32.xlu0 %v1105_v42  ;;  %v1098_v43 = vpop.xlane.xlu2 %1097 }
 0xeb2   :  { %v1100_v44 = vmul.f32 %v1098_v43, %v1863_v10 }
 0xeb4   :  { %v1102_v33 = vsub.f32 %v2164_v38, %v1100_v44  ;;  %v1645_v44 = vld [vmem:[%s2246_s9 + $0x1] ss:$0 sm:$0xff] }
 0xeb6   :  { %v1104_v45 = vmul.f32 %v1102_v33, %v1102_v33 }
 0xeb8   :  { %v1108_v46 = vsel %vm47_vm0, %v1104_v45, 0.0 }
 0xeb9   :  { %1109 = vadd.xlane.f32.xlu1 %v1108_v46 }
 0xf24   :  { %v1107_v49 = vpop.xlane.xlu0 %1106 }
 0xf25   :  { %v1111_v50 = vmul.f32 %v1107_v49, %v1863_v10 }
 0xf27   :  { %v1113_v52 = vadd.f32 1e-05, %v1111_v50 }
 0xf29   :  { %1729 = vrsqrt.f32 %v1113_v52  ;;  %vm1121_vm9 = vweird.f32 %v1113_v52 }
 0xf2c   :  { %v1110_v53 = vpop.xlane.xlu1 %1109 }
 0xf2d   :  { %v1112_v54 = vmul.f32 %v1110_v53, %v1863_v10 }
 0xf2f   :  { %v1730_v55 = vpop.eup %1729  ;;  %v1114_v56 = vadd.f32 1e-05, %v1112_v54 }
 0xf30   :  { %v1116_v59 = vmul.f32 %v1730_v55, %v1113_v52  ;;  %vm1122_vm8 = vweird.f32 %v1730_v55 }
 0xf31   :  { %1731 = vrsqrt.f32 %v1114_v56  ;;  %vm1123_vm11 = vmor %vm1121_vm9, %vm1122_vm8  ;;  %vm1131_vm12 = vweird.f32 %v1114_v56 }
 0xf32   :  { %v1117_v60 = vmul.f32 %v1730_v55, %v1116_v59 }
 0xf34   :  { %v1118_v61 = vmul.f32 0.5, %v1117_v60 }
 0xf36   :  { %v1119_v1 = vsub.f32 1.5, %v1118_v61 }
 0xf37   :  { %v1732_v62 = vpop.eup %1731 }
 0xf38   :  { %v1126_v3 = vmul.f32 %v1732_v62, %v1114_v56  ;;  %v1120_v4 = vmul.f32 %v1730_v55, %v1119_v1  ;;  %vm1132_vm10 = vweird.f32 %v1732_v62 }
 0xf39   :  { %vm1133_vm13 = vmor %vm1131_vm12, %vm1132_vm10 }
 0xf3a   :  { %v1127_v16 = vmul.f32 %v1732_v62, %v1126_v3  ;;  %v1124_v8 = vsel %vm1123_vm11, %v1730_v55, %v1120_v4  ;;  %v1589_v3 = vld [vmem:[%s2247_s10] sm:$0xff] }
 0xf3b   :  { %v1135_v12 = vmul.f32 %v1124_v8, %v1101_v29 }
 0xf3c   :  { %v1128_v6 = vmul.f32 0.5, %v1127_v16 }
 0xf3e   :  { %v1129_v7 = vsub.f32 1.5, %v1128_v6 }
 0xf40   :  { %v1130_v9 = vmul.f32 %v1732_v62, %v1129_v7 }
 0xf42   :  { %v1134_v11 = vsel %vm1133_vm13, %v1732_v62, %v1130_v9 }
 0xf43   :  { %v1136_v13 = vmul.f32 %v1134_v11, %v1102_v33 }
 0xf45   :  { %v1137_v14 = vpack.c.bf16 %v1136_v13, %v1135_v12 }
 0xf47   :  { %1502 = vmatmul.msk.bf16.vlgmr.msra.gmra.mxu3 %vm47_vm0, %v1137_v14 }
 0xfca   :  { %v1172_v24 = vpop.f32.mrf.mxu3 }
 0xfcb   :  { %v1173_v25 = vadd.f32 %v1644_v23, %v1172_v24 }
 0xfcd   :  { %v1179_v2 = vmul.f32 0.044715, %v1173_v25  ;;  %v1177_v40 = vmul.f32 0.5, %v1173_v25 }
 0xfcf   :  { %v1181_v5 = vmul.f32 %v1179_v2, %v1173_v25 }
 0xfd1   :  { %v1183_v26 = vmul.f32 %v1181_v5, %v1173_v25  ;;  %v1646_v5 = vld [vmem:[%s2248_s11] ss:$0 sm:$0xff] }
 0xfd2   :  { %v1174_v27 = vpop.f32.mrf.mxu3 }
 0xfd3   :  { %v1185_v28 = vadd.f32 %v1183_v26, %v1173_v25  ;;  %v1175_v30 = vadd.f32 %v1644_v23, %v1174_v27 }
 0xfd5   :  { %v1180_v31 = vmul.f32 0.044715, %v1175_v30  ;;  %v1187_v32 = vmul.f32 0.7978846, %v1185_v28  ;;  %v1178_v19 = vmul.f32 0.5, %v1175_v30 }
 0xfd7   :  { %v1182_v58 = vmul.f32 %v1180_v31, %v1175_v30  ;;  %1733 = vtanh.f32 %v1187_v32 }
 0xfd9   :  { %v1184_v34 = vmul.f32 %v1182_v58, %v1175_v30 }
 0xfdb   :  { %v1186_v57 = vadd.f32 %v1184_v34, %v1175_v30 }
 0xfdd   :  { %v1188_v36 = vmul.f32 0.7978846, %v1186_v57  ;;  %v1734_v15 = vpop.eup %1733 }
 0xfde   :  { %v1191_v37 = vadd.f32 1.0, %v1734_v15 }
 0xfdf   :  { %1735 = vtanh.f32 %v1188_v36 }
 0xfe0   :  { %v1193_v41 = vmul.f32 %v1191_v37, %v1177_v40 }
 0xfe5   :  { %v1736_v39 = vpop.eup %1735 }
 0xfe6   :  { %v1192_v29 = vadd.f32 1.0, %v1736_v39 }
 0xfe8   :  { %v1194_v42 = vmul.f32 %v1192_v29, %v1178_v19 }
 0xfea   :  { %v1195_v43 = vpack.c.bf16 %v1194_v42, %v1193_v41 }
 0xfec   :  { %1269 = vmatmul.bf16.vlgmr.msrb.gmra.mxu2 %v1195_v43 }
0x106f   :  { %v1270_v33 = vpop.f32.mrf.mxu2 }
0x1070   :  { %v1275_v45 = vadd.f32 %v1270_v33, %v2159_v35 }
0x1072   :  { %v1282_v46 = vadd.f32 %v1645_v44, %v1275_v45 }
0x1074   :  { %v1284_v47 = vsel %vm47_vm0, %v1282_v46, 0.0 }
0x1075   :  { %1285 = vadd.xlane.f32.xlu2 %v1284_v47 }
0x1077   :  { %v1272_v48 = vpop.f32.mrf.mxu2 }
0x1078   :  { %v1276_v49 = vadd.f32 %v1272_v48, %v2164_v38  ;;  %v1590_v38 = vld [vmem:[%s2247_s10 + $0x8] sm:$0xff] }
0x1079   :  { %1358 = vmatpush.bf16.msra.mxu0 %v1590_v38 }
0x107a   :  { %v1283_v50 = vadd.f32 %v1645_v44, %v1276_v49 }
0x107c   :  { %v1287_v52 = vsel %vm47_vm0, %v1283_v50, 0.0 }
0x107d   :  { %1288 = vadd.xlane.f32.xlu0 %v1287_v52  ;;  %1359 = vmatpush.bf16.msra.mxu0 %v1589_v3 }
0x10e8   :  { %v1286_v53 = vpop.xlane.xlu2 %1285 }
0x10e9   :  { %v1290_v54 = vmul.f32 %v1286_v53, %v1863_v10 }
0x10eb   :  { %v1292_v55 = vsub.f32 %v1282_v46, %v1290_v54 }
0x10ed   :  { %v1294_v56 = vmul.f32 %v1292_v55, %v1292_v55 }
0x10ef   :  { %v1296_v59 = vsel %vm47_vm0, %v1294_v56, 0.0 }
0x10f0   :  { %1297 = vadd.xlane.f32.xlu1 %v1296_v59  ;;  %v1289_v35 = vpop.xlane.xlu0 %1288 }
0x10f1   :  { %v1291_v60 = vmul.f32 %v1289_v35, %v1863_v10 }
0x10f3   :  { %v1293_v61 = vsub.f32 %v1283_v50, %v1291_v60 }
0x10f5   :  { %v1295_v62 = vmul.f32 %v1293_v61, %v1293_v61 }
0x10f7   :  { %v1299_v1 = vsel %vm47_vm0, %v1295_v62, 0.0 }
0x10f8   :  { %1300 = vadd.xlane.f32.xlu2 %v1299_v1 }
0x1163   :  { %v1298_v16 = vpop.xlane.xlu1 %1297 }
0x1164   :  { %v1302_v4 = vmul.f32 %v1298_v16, %v1863_v10 }
0x1166   :  { %v1304_v6 = vadd.f32 1e-05, %v1302_v4 }
0x1168   :  { %1737 = vrsqrt.f32 %v1304_v6  ;;  %vm1312_vm15 = vweird.f32 %v1304_v6 }
0x116b   :  { %v1301_v7 = vpop.xlane.xlu2 %1300 }
0x116c   :  { %v1303_v8 = vmul.f32 %v1301_v7, %v1863_v10 }
0x116e   :  { %v1738_v9 = vpop.eup %1737  ;;  %v1305_v11 = vadd.f32 1e-05, %v1303_v8 }
0x116f   :  { %v1307_v12 = vmul.f32 %v1738_v9, %v1304_v6  ;;  %vm1313_vm14 = vweird.f32 %v1738_v9 }
0x1170   :  { %1739 = vrsqrt.f32 %v1305_v11  ;;  %vm1314_vm2 = vmor %vm1312_vm15, %vm1313_vm14  ;;  %vm1322_vm3 = vweird.f32 %v1305_v11 }
0x1171   :  { %v1308_v13 = vmul.f32 %v1738_v9, %v1307_v12 }
0x1173   :  { %v1309_v14 = vmul.f32 0.5, %v1308_v13 }
0x1175   :  { %v1310_v18 = vsub.f32 1.5, %v1309_v14 }
0x1176   :  { %v1740_v17 = vpop.eup %1739 }
0x1177   :  { %v1317_v20 = vmul.f32 %v1740_v17, %v1305_v11  ;;  %v1311_v63 = vmul.f32 %v1738_v9, %v1310_v18  ;;  %vm1323_vm1 = vweird.f32 %v1740_v17 }
0x1178   :  { %vm1324_vm4 = vmor %vm1322_vm3, %vm1323_vm1 }
0x1179   :  { %v1318_v21 = vmul.f32 %v1740_v17, %v1317_v20  ;;  %v1315_v22 = vsel %vm1314_vm2, %v1738_v9, %v1311_v63 }
0x117a   :  { %v1326_v24 = vmul.f32 %v1315_v22, %v1292_v55 }
0x117b   :  { %v1319_v51 = vmul.f32 0.5, %v1318_v21 }
0x117d   :  { %v1320_v0 = vsub.f32 1.5, %v1319_v51 }
0x117f   :  { %v1321_v23 = vmul.f32 %v1740_v17, %v1320_v0 }
0x1181   :  { %v1325_v10 = vsel %vm1324_vm4, %v1740_v17, %v1321_v23 }
0x1182   :  { %v1327_v25 = vmul.f32 %v1325_v10, %v1293_v61 }
0x1184   :  { %v1328_v2 = vpack.c.bf16 %v1327_v25, %v1326_v24 }
0x1186   :  { %1560 = vmatmul.msk.bf16.vlgmr.msra.gmra.mxu0 %vm47_vm0, %v1328_v2 }
0x1203   :  { %v1361_v26 = vpop.f32.mrf.mxu0 }
0x1204   :  { %v1362_v27 = vadd.f32 %v1646_v5, %v1361_v26 }
0x1206   :  { %1366 = vst [vmem:[#allocation2] sm:$0xff] %v1362_v27 }
0x120b   :  { %v1363_v28 = vpop.f32.mrf.mxu0 }
0x120c   :  { %v1364_v30 = vadd.f32 %v1646_v5, %v1363_v28 }
0x120e   :  { %1367 = vst [vmem:[#allocation2 + $0x8] sm:$0xff] %v1364_v30 }
0x120f   :  { %1380 = dma.vmem_to_hbm [thread:$0]  %s1373_s20, 256, %s1375_s27, [#allocation3], %s1783_s24, %s1783_s24, %s2256_s30  }
0x1210   :  { %1765 = dma.done.wait [#allocation3], 256  }
0x1211   :  { %1766 = vsyncadd [#allocation3], 4294967040 }
0x1212   :  { %1385 = vsyncpa [#allocation3], 1 }

</bundles_post_ra>
